<compile_context>
chip_gen: v5e
topology: v5e:2x2
jax: 0.10.0
libtpu: 0.0.40
codegen_flags: <defaults>
</compile_context>

<pallas_src>
import functools

import jax
import jax.numpy as jnp
from jax import lax
from jax.experimental import pallas as pl
from jax.experimental.pallas import tpu as pltpu


# --------------------------------------------------------------------------- #
# One-time parameter preparation (hoisted out of the forward pass).
# --------------------------------------------------------------------------- #
def prepare_params(params, seq_len, compute_dtype=jnp.bfloat16):
    """Transpose Linear weights (out,in)->(in,out), fold the module's 1/sqrt(S) score
    scale into Wq/bq, cast matmul weights to the MXU compute dtype, reshape vectors
    to (1, D).  Call once at init for a fixed sequence length."""
    D = params["wq"].shape[0]
    scale = 1.0 / (float(seq_len) ** 0.5)
    return {
        "wq": (params["wq"].T * scale).astype(compute_dtype),
        "bq": (params["bq"] * scale).reshape(1, D).astype(jnp.float32),
        "wk": params["wk"].T.astype(compute_dtype),
        "bk": params["bk"].reshape(1, D).astype(jnp.float32),
        "wv": params["wv"].T.astype(compute_dtype),
        "bv": params["bv"].reshape(1, D).astype(jnp.float32),
        "gamma": params["gamma"].reshape(1, D).astype(jnp.float32),
        "beta": params["beta"].reshape(1, D).astype(jnp.float32),
    }


# --------------------------------------------------------------------------- #
# Fused kernel: QKV projection + per-head scores + softmax + post-softmax triu
# mask + attn @ V + raw-view head merge + residual + LayerNorm.
# One grid step per block of batch elements; single lane-dense (Bt, S, D) store.
# --------------------------------------------------------------------------- #
def _mha_fused_kernel(x_ref, wq_ref, bq_ref, wk_ref, bk_ref, wv_ref, bv_ref,
                      gamma_ref, beta_ref, out_ref, *scratch,
                      num_heads, seq_len, dim, eps, approx_recip, head_merge):
    bt = x_ref.shape[0]
    dh = dim // num_heads
    cdtype = wq_ref.dtype                               # MXU compute dtype (f32 or bf16)

    x = x_ref[...]                                      # (Bt, S, D) f32, kept for residual
    xc = x.reshape(bt * seq_len, dim).astype(cdtype)    # fold batch rows -> one big matmul

    # Projections: low-precision operands, f32 accumulation.  1/sqrt(S) pre-folded in Wq/bq.
    q = jnp.dot(xc, wq_ref[...], preferred_element_type=jnp.float32) + bq_ref[...]
    k = jnp.dot(xc, wk_ref[...], preferred_element_type=jnp.float32) + bk_ref[...]
    v = jnp.dot(xc, wv_ref[...], preferred_element_type=jnp.float32) + bv_ref[...]

    q = q.reshape(bt, seq_len, dim).astype(cdtype)
    k = k.reshape(bt, seq_len, dim).astype(cdtype)
    v = jnp.where(jnp.isnan(v), 0.0, v)                 # module: v[v != v] = 0
    v = v.reshape(bt, seq_len, dim).astype(cdtype)

    # triu(ones(S, S), diagonal=0): keep j >= i (applied AFTER softmax, as in the module).
    row = lax.broadcasted_iota(jnp.int32, (seq_len, seq_len), 0)
    col = lax.broadcasted_iota(jnp.int32, (seq_len, seq_len), 1)
    keep = col >= row

    z_heads = []
    for h in range(num_heads):                          # small H: unrolled (see TODOs)
        qh = q[:, :, h * dh:(h + 1) * dh]               # (Bt, S, dh)
        kh = k[:, :, h * dh:(h + 1) * dh]
        vh = v[:, :, h * dh:(h + 1) * dh]

        s = jnp.einsum("bqd,bkd->bqk", qh, kh,
                       preferred_element_type=jnp.float32)          # (Bt, S, S) f32
        # NOTE: scale already folded into q; equivalent to the reference for finite scores.
        s = jnp.where(jnp.isnan(s), -jnp.inf, s)

        m = jnp.max(s, axis=-1, keepdims=True)
        p = jnp.exp(s - m)
        denom = jnp.sum(p, axis=-1, keepdims=True)
        attn = p * pl.reciprocal(denom, approx=approx_recip)         # EUP, not a VALU divide
        attn = jnp.where(jnp.isnan(attn), 0.0, attn)                 # softmax NaN -> 0
        attn = jnp.where(keep, attn, 0.0)                            # post-softmax triu mask

        z_heads.append(jnp.einsum("bqk,bkd->bqd", attn.astype(cdtype), vh,
                                  preferred_element_type=jnp.float32))  # (Bt, S, dh) f32

    # torch's z_init.view(B, S, -1) of the contiguous (B, H, S, dh) tensor: head h fills
    # output rows [h*S/H, (h+1)*S/H) with its (S, dh) block read row-major.
    if head_merge == "reshape":
        # Register-only merge (review-preferred): per-head (Bt,S,dh)->(Bt,S/H,D) reshape
        # + row concat.  No scratch, no strided sublane reads, no lane concat.
        rows = seq_len // num_heads
        z = jnp.concatenate([zh.reshape(bt, rows, dim) for zh in z_heads], axis=1)
    else:
        # Fallback: previously-validated scratch + strided-read merge.
        zs_ref = scratch[0]                                          # (Bt, H*S, dh)
        for h, zh in enumerate(z_heads):
            zs_ref[:, pl.ds(h * seq_len, seq_len), :] = zh
        per_batch = []
        for b in range(bt):
            blocks = [zs_ref[b, pl.ds(a, seq_len, stride=num_heads), :]
                      for a in range(num_heads)]
            per_batch.append(jnp.concatenate(blocks, axis=-1))       # (S, D)
        z = jnp.stack(per_batch, axis=0)                             # (Bt, S, D)

    # Fused residual + LayerNorm epilogue; one lane-dense (Bt, S, D) store.
    y = x + z
    mean = jnp.mean(y, axis=-1, keepdims=True)
    c = y - mean
    var = jnp.mean(c * c, axis=-1, keepdims=True)
    out_ref[...] = (c * lax.rsqrt(var + eps) * gamma_ref[...]
                    + beta_ref[...]).astype(out_ref.dtype)


# --------------------------------------------------------------------------- #
# Wrapper
# --------------------------------------------------------------------------- #
def _pick_block_b(batch, seq_len):
    # Enough rows per grid step (~512) to amortize the ~0.35 us / ~600-cycle per-step
    # overhead without blowing up the per-step VMEM working set.
    target = max(1, 512 // max(seq_len, 1))
    bb = min(batch, target)
    while batch % bb:
        bb -= 1
    return max(bb, 1)


def _vmem_limit_bytes(block_b, seq_len, dim, num_heads, w_itemsize, num_blocks):
    # Re-derive the scoped-VMEM limit per generation instead of a blanket constant:
    # compute roughly what this kernel needs and never ask for more than half the chip
    # (128 MiB v5e/v6e, 64 MiB v7x), leaving headroom for compiler-internal scratch.
    act = block_b * seq_len * dim * 4
    io = (2 if num_blocks > 1 else 1) * 2 * act                      # x + out (+dbl buf)
    weights = 3 * dim * dim * w_itemsize + 5 * dim * 4               # single-buffered
    interm = 10 * act + 3 * block_b * seq_len * seq_len * 4          # q/k/v, scores, z, LN
    need = io + weights + interm
    try:
        cap = pltpu.get_tpu_info().vmem_capacity_bytes
    except Exception:
        cap = 64 * 1024 * 1024                                       # conservative (v7x)
    return int(min(max(need, 32 * 1024 * 1024), cap // 2))


def multi_head_attention(x, prepared, *, num_heads, eps=1e-5, block_b=None,
                         head_merge="reshape"):
    B, S, D = x.shape
    assert D % num_heads == 0
    if S % num_heads != 0:
        head_merge = "strided"          # raw view straddles head boundaries (see TODO)

    if block_b is None:
        block_b = _pick_block_b(B, S)
    assert B % block_b == 0
    num_blocks = B // block_b

    cdtype = prepared["wq"].dtype
    approx_recip = bool(cdtype != jnp.float32)   # keep exact divide in the f32 path

    x_spec = pl.BlockSpec((block_b, S, D), lambda b: (b, 0, 0))
    if num_blocks > 1:
        # Grid-invariant operands: single-buffer them (halves their resident VMEM).
        w_spec = pl.BlockSpec((D, D), lambda b: (0, 0), pipeline_mode=pl.Buffered(1))
        v_spec = pl.BlockSpec((1, D), lambda b: (0, 0), pipeline_mode=pl.Buffered(1))
    else:
        # Single grid step: pipelining is moot, keep plain specs.
        w_spec = pl.BlockSpec((D, D), lambda b: (0, 0))
        v_spec = pl.BlockSpec((1, D), lambda b: (0, 0))

    scratch_shapes = []
    if head_merge == "strided":
        scratch_shapes.append(
            pltpu.VMEM((block_b, num_heads * S, D // num_heads), jnp.float32))

    kernel = functools.partial(
        _mha_fused_kernel, num_heads=num_heads, seq_len=S, dim=D, eps=eps,
        approx_recip=approx_recip, head_merge=head_merge)

    return pl.pallas_call(
        kernel,
        out_shape=jax.ShapeDtypeStruct((B, S, D), jnp.float32),
        grid=(num_blocks,),
        in_specs=[x_spec,
                  w_spec, v_spec,      # Q
                  w_spec, v_spec,      # K
                  w_spec, v_spec,      # V
                  v_spec, v_spec],     # gamma, beta
        out_specs=x_spec,
        scratch_shapes=scratch_shapes,
        compiler_params=pltpu.CompilerParams(
            dimension_semantics=("parallel",),
            vmem_limit_bytes=_vmem_limit_bytes(block_b, S, D, num_heads,
                                               cdtype.itemsize, num_blocks)),
    )(x, prepared["wq"], prepared["bq"], prepared["wk"], prepared["bk"],
      prepared["wv"], prepared["bv"], prepared["gamma"], prepared["beta"])


# --------------------------------------------------------------------------- #
# Pure-JAX reference (mirrors the PyTorch forward) for the correctness check.
# --------------------------------------------------------------------------- #
def _reference(x, params, *, num_heads, eps=1e-5):
    B, S, D = x.shape
    dh = D // num_heads
    q = x @ params["wq"].T + params["bq"]
    k = x @ params["wk"].T + params["bk"]
    v = x @ params["wv"].T + params["bv"]
    q = q.reshape(B, S, num_heads, dh).transpose(0, 2, 1, 3)
    k = k.reshape(B, S, num_heads, dh).transpose(0, 2, 1, 3)
    v = v.reshape(B, S, num_heads, dh).transpose(0, 2, 1, 3)
    qk = jnp.einsum("bhqd,bhkd->bhqk", q, k)
    qk = jnp.where(jnp.isnan(qk), -jnp.inf, qk)
    qk = qk / jnp.sqrt(jnp.float32(S))
    qk = jax.nn.softmax(qk, axis=-1)
    qk = jnp.where(jnp.isnan(qk), 0.0, qk)
    v = jnp.where(jnp.isnan(v), 0.0, v)
    mask = jnp.triu(jnp.ones((S, S), jnp.float32), k=0)
    qk = qk * mask
    z = jnp.einsum("bhqk,bhkd->bhqd", qk, v)
    z = z.reshape(B, S, D)          # same raw view as torch
    y = x + z
    mean = y.mean(-1, keepdims=True)
    var = ((y - mean) ** 2).mean(-1, keepdims=True)
    return (y - mean) / jnp.sqrt(var + eps) * params["gamma"] + params["beta"]


if __name__ == "__main__":
    B, S, D, H = 2, 8, 32, 4

    key = jax.random.PRNGKey(0)
    ks = jax.random.split(key, 8)
    params = {
        "wq": jax.random.normal(ks[0], (D, D), jnp.float32) * 0.1,
        "bq": jax.random.normal(ks[1], (D,), jnp.float32) * 0.1,
        "wk": jax.random.normal(ks[2], (D, D), jnp.float32) * 0.1,
        "bk": jax.random.normal(ks[3], (D,), jnp.float32) * 0.1,
        "wv": jax.random.normal(ks[4], (D, D), jnp.float32) * 0.1,
        "bv": jax.random.normal(ks[5], (D,), jnp.float32) * 0.1,
        "gamma": jnp.ones((D,), jnp.float32),     # nn.LayerNorm default init
        "beta": jnp.zeros((D,), jnp.float32),
    }
    x = jax.random.normal(ks[6], (B, S, D), jnp.float32)

    ref = _reference(x, params, num_heads=H)

    # f32 MXU path: must match the pure-JAX reference to 1e-4.
    prep_f32 = prepare_params(params, S, compute_dtype=jnp.float32)

    def _run_f32(merge_mode):
        o = jax.block_until_ready(
            multi_head_attention(x, prep_f32, num_heads=H, head_merge=merge_mode))
        assert o.shape == (B, S, D)
        assert jnp.allclose(o, ref, atol=1e-4, rtol=1e-4), "f32 kernel mismatch vs reference"
        return o

    try:
        merge = "reshape"
        out = _run_f32(merge)
    except Exception:
        # Mosaic support for the sub-(8,128) minor-dim reshape in the head merge varies by
        # toolchain; fall back to the previously-validated strided-scratch merge.
        merge = "strided"
        out = _run_f32(merge)

    # bf16-operand / f32-accumulate path (v6e/v7x MXU): validated at a looser tolerance.
    prep_bf16 = prepare_params(params, S, compute_dtype=jnp.bfloat16)
    out_bf16 = jax.block_until_ready(
        multi_head_attention(x, prep_bf16, num_heads=H, head_merge=merge))
    assert out_bf16.shape == (B, S, D)
    assert jnp.allclose(out_bf16, ref, atol=3e-2, rtol=3e-2), "bf16 kernel mismatch vs reference"

    print("KERNEL_OK")
</pallas_src>

<mosaic_0001>
module attributes {stable_mosaic.version = 11 : i64} {
  func.func @_mha_fused_kernel(%arg0: i32, %arg1: memref<2x8x32xf32, #tpu.memory_space<vmem>>, %arg2: memref<32x32xf32, #tpu.memory_space<vmem>>, %arg3: memref<1x32xf32, #tpu.memory_space<vmem>>, %arg4: memref<32x32xf32, #tpu.memory_space<vmem>>, %arg5: memref<1x32xf32, #tpu.memory_space<vmem>>, %arg6: memref<32x32xf32, #tpu.memory_space<vmem>>, %arg7: memref<1x32xf32, #tpu.memory_space<vmem>>, %arg8: memref<1x32xf32, #tpu.memory_space<vmem>>, %arg9: memref<1x32xf32, #tpu.memory_space<vmem>>, %arg10: memref<2x8x32xf32, #tpu.memory_space<vmem>>) attributes {dimension_semantics = [#tpu.dimension_semantics<parallel>], iteration_bounds = array<i64: 1>, scalar_prefetch = 0 : i64, scratch_operands = 0 : i64, tpu.core_type = #tpu.core_type<tc>, window_params = [{transform_indices = @transform_0, window_bounds = array<i64: 2, 8, 32>}, {pipeline_mode = #tpu.pipeline_mode<synchronous>, transform_indices = @transform_1, window_bounds = array<i64: 32, 32>}, {pipeline_mode = #tpu.pipeline_mode<synchronous>, transform_indices = @transform_2, window_bounds = array<i64: 1, 32>}, {pipeline_mode = #tpu.pipeline_mode<synchronous>, transform_indices = @transform_3, window_bounds = array<i64: 32, 32>}, {pipeline_mode = #tpu.pipeline_mode<synchronous>, transform_indices = @transform_4, window_bounds = array<i64: 1, 32>}, {pipeline_mode = #tpu.pipeline_mode<synchronous>, transform_indices = @transform_5, window_bounds = array<i64: 32, 32>}, {pipeline_mode = #tpu.pipeline_mode<synchronous>, transform_indices = @transform_6, window_bounds = array<i64: 1, 32>}, {pipeline_mode = #tpu.pipeline_mode<synchronous>, transform_indices = @transform_7, window_bounds = array<i64: 1, 32>}, {pipeline_mode = #tpu.pipeline_mode<synchronous>, transform_indices = @transform_8, window_bounds = array<i64: 1, 32>}, {transform_indices = @transform_9, window_bounds = array<i64: 2, 8, 32>}]} {
    %c0 = arith.constant 0 : index
    %c0_0 = arith.constant 0 : index
    %c0_1 = arith.constant 0 : index
    %0 = vector.load %arg1[%c0, %c0_0, %c0_1] : memref<2x8x32xf32, #tpu.memory_space<vmem>>, vector<2x8x32xf32>
    %1 = vector.shape_cast %0 : vector<2x8x32xf32> to vector<16x32xf32>
    %c0_2 = arith.constant 0 : index
    %c0_3 = arith.constant 0 : index
    %2 = vector.load %arg2[%c0_2, %c0_3] : memref<32x32xf32, #tpu.memory_space<vmem>>, vector<32x32xf32>
    %cst = arith.constant dense<0.000000e+00> : vector<16x32xf32>
    %3 = tpu.matmul %1, %2, %cst {dimension_numbers = #tpu.dot_dimension_numbers<[1], [0], [0], [1], [0, 0, 1, 1], [], []>} : vector<16x32xf32>, vector<32x32xf32>, vector<16x32xf32> -> vector<16x32xf32>
    %c0_4 = arith.constant 0 : index
    %c0_5 = arith.constant 0 : index
    %4 = vector.load %arg3[%c0_4, %c0_5] : memref<1x32xf32, #tpu.memory_space<vmem>>, vector<1x32xf32>
    %5 = vector.broadcast %4 : vector<1x32xf32> to vector<16x32xf32>
    %6 = arith.addf %3, %5 : vector<16x32xf32>
    %c0_6 = arith.constant 0 : index
    %c0_7 = arith.constant 0 : index
    %7 = vector.load %arg4[%c0_6, %c0_7] : memref<32x32xf32, #tpu.memory_space<vmem>>, vector<32x32xf32>
    %cst_8 = arith.constant dense<0.000000e+00> : vector<16x32xf32>
    %8 = tpu.matmul %1, %7, %cst_8 {dimension_numbers = #tpu.dot_dimension_numbers<[1], [0], [0], [1], [0, 0, 1, 1], [], []>} : vector<16x32xf32>, vector<32x32xf32>, vector<16x32xf32> -> vector<16x32xf32>
    %c0_9 = arith.constant 0 : index
    %c0_10 = arith.constant 0 : index
    %9 = vector.load %arg5[%c0_9, %c0_10] : memref<1x32xf32, #tpu.memory_space<vmem>>, vector<1x32xf32>
    %10 = vector.broadcast %9 : vector<1x32xf32> to vector<16x32xf32>
    %11 = arith.addf %8, %10 : vector<16x32xf32>
    %c0_11 = arith.constant 0 : index
    %c0_12 = arith.constant 0 : index
    %12 = vector.load %arg6[%c0_11, %c0_12] : memref<32x32xf32, #tpu.memory_space<vmem>>, vector<32x32xf32>
    %cst_13 = arith.constant dense<0.000000e+00> : vector<16x32xf32>
    %13 = tpu.matmul %1, %12, %cst_13 {dimension_numbers = #tpu.dot_dimension_numbers<[1], [0], [0], [1], [0, 0, 1, 1], [], []>} : vector<16x32xf32>, vector<32x32xf32>, vector<16x32xf32> -> vector<16x32xf32>
    %c0_14 = arith.constant 0 : index
    %c0_15 = arith.constant 0 : index
    %14 = vector.load %arg7[%c0_14, %c0_15] : memref<1x32xf32, #tpu.memory_space<vmem>>, vector<1x32xf32>
    %15 = vector.broadcast %14 : vector<1x32xf32> to vector<16x32xf32>
    %16 = arith.addf %13, %15 : vector<16x32xf32>
    %17 = vector.shape_cast %6 : vector<16x32xf32> to vector<2x8x32xf32>
    %18 = vector.shape_cast %11 : vector<16x32xf32> to vector<2x8x32xf32>
    %19 = arith.cmpf one, %16, %16 : vector<16x32xf32>
    %cst_16 = arith.constant 0.000000e+00 : f32
    %20 = vector.broadcast %cst_16 : f32 to vector<16x32xf32>
    %21 = arith.select %19, %20, %16 : vector<16x32xi1>, vector<16x32xf32>
    %22 = vector.shape_cast %21 : vector<16x32xf32> to vector<2x8x32xf32>
    %23 = tpu.iota {dimensions = array<i32: 0>} : vector<8x8xi32>
    %24 = tpu.iota {dimensions = array<i32: 1>} : vector<8x8xi32>
    %25 = arith.cmpi sge, %24, %23 : vector<8x8xi32>
    %26 = vector.extract_strided_slice %17 {offsets = [0, 0, 0], sizes = [2, 8, 8], strides = [1, 1, 1]} : vector<2x8x32xf32> to vector<2x8x8xf32>
    %27 = vector.extract_strided_slice %18 {offsets = [0, 0, 0], sizes = [2, 8, 8], strides = [1, 1, 1]} : vector<2x8x32xf32> to vector<2x8x8xf32>
    %28 = vector.extract_strided_slice %22 {offsets = [0, 0, 0], sizes = [2, 8, 8], strides = [1, 1, 1]} : vector<2x8x32xf32> to vector<2x8x8xf32>
    "tpu.trace_start"() <{level = 10 : i32, message = "bqd,bkd->bqk"}> : () -> ()
    %cst_17 = arith.constant dense<0.000000e+00> : vector<2x8x8xf32>
    %29 = tpu.matmul %26, %27, %cst_17 {dimension_numbers = #tpu.dot_dimension_numbers<[2], [2], [1], [1], [0, 0, 0, 1, 1, 1], [0], [0]>} : vector<2x8x8xf32>, vector<2x8x8xf32>, vector<2x8x8xf32> -> vector<2x8x8xf32>
    "tpu.trace_stop"() : () -> ()
    %30 = arith.cmpf one, %29, %29 : vector<2x8x8xf32>
    %cst_18 = arith.constant 0xFF800000 : f32
    %31 = vector.broadcast %cst_18 : f32 to vector<2x8x8xf32>
    %32 = arith.select %30, %31, %29 : vector<2x8x8xi1>, vector<2x8x8xf32>
    %cst_19 = arith.constant dense<0xFF800000> : vector<2x8xf32>
    %33 = vector.multi_reduction <maximumf>, %32, %cst_19 [2] : vector<2x8x8xf32> to vector<2x8xf32>
    %34 = vector.shape_cast %33 : vector<2x8xf32> to vector<2x8x1xf32>
    %35 = vector.broadcast %34 : vector<2x8x1xf32> to vector<2x8x8xf32>
    %36 = arith.subf %32, %35 : vector<2x8x8xf32>
    %37 = math.exp %36 : vector<2x8x8xf32>
    %cst_20 = arith.constant dense<0.000000e+00> : vector<2x8xf32>
    %38 = vector.multi_reduction <add>, %37, %cst_20 [2] : vector<2x8x8xf32> to vector<2x8xf32>
    %39 = vector.shape_cast %38 : vector<2x8xf32> to vector<2x8x1xf32>
    %40 = tpu.reciprocal %39 : vector<2x8x1xf32> -> vector<2x8x1xf32>
    %41 = vector.broadcast %40 : vector<2x8x1xf32> to vector<2x8x8xf32>
    %42 = arith.mulf %37, %41 : vector<2x8x8xf32>
    %43 = arith.cmpf one, %42, %42 : vector<2x8x8xf32>
    %cst_21 = arith.constant 0.000000e+00 : f32
    %44 = vector.broadcast %cst_21 : f32 to vector<2x8x8xf32>
    %45 = arith.select %43, %44, %42 : vector<2x8x8xi1>, vector<2x8x8xf32>
    %cst_22 = arith.constant 0.000000e+00 : f32
    %46 = vector.shape_cast %25 : vector<8x8xi1> to vector<1x8x8xi1>
    %47 = vector.broadcast %46 : vector<1x8x8xi1> to vector<2x8x8xi1>
    %48 = vector.broadcast %cst_22 : f32 to vector<2x8x8xf32>
    %49 = arith.select %47, %45, %48 : vector<2x8x8xi1>, vector<2x8x8xf32>
    "tpu.trace_start"() <{level = 10 : i32, message = "bqk,bkd->bqd"}> : () -> ()
    %cst_23 = arith.constant dense<0.000000e+00> : vector<2x8x8xf32>
    %50 = tpu.matmul %49, %28, %cst_23 {dimension_numbers = #tpu.dot_dimension_numbers<[2], [1], [1], [2], [0, 0, 0, 1, 1, 2], [0], [0]>} : vector<2x8x8xf32>, vector<2x8x8xf32>, vector<2x8x8xf32> -> vector<2x8x8xf32>
    "tpu.trace_stop"() : () -> ()
    %51 = vector.extract_strided_slice %17 {offsets = [0, 0, 8], sizes = [2, 8, 8], strides = [1, 1, 1]} : vector<2x8x32xf32> to vector<2x8x8xf32>
    %52 = vector.extract_strided_slice %18 {offsets = [0, 0, 8], sizes = [2, 8, 8], strides = [1, 1, 1]} : vector<2x8x32xf32> to vector<2x8x8xf32>
    %53 = vector.extract_strided_slice %22 {offsets = [0, 0, 8], sizes = [2, 8, 8], strides = [1, 1, 1]} : vector<2x8x32xf32> to vector<2x8x8xf32>
    "tpu.trace_start"() <{level = 10 : i32, message = "bqd,bkd->bqk"}> : () -> ()
    %cst_24 = arith.constant dense<0.000000e+00> : vector<2x8x8xf32>
    %54 = tpu.matmul %51, %52, %cst_24 {dimension_numbers = #tpu.dot_dimension_numbers<[2], [2], [1], [1], [0, 0, 0, 1, 1, 1], [0], [0]>} : vector<2x8x8xf32>, vector<2x8x8xf32>, vector<2x8x8xf32> -> vector<2x8x8xf32>
    "tpu.trace_stop"() : () -> ()
    %55 = arith.cmpf one, %54, %54 : vector<2x8x8xf32>
    %cst_25 = arith.constant 0xFF800000 : f32
    %56 = vector.broadcast %cst_25 : f32 to vector<2x8x8xf32>
    %57 = arith.select %55, %56, %54 : vector<2x8x8xi1>, vector<2x8x8xf32>
    %cst_26 = arith.constant dense<0xFF800000> : vector<2x8xf32>
    %58 = vector.multi_reduction <maximumf>, %57, %cst_26 [2] : vector<2x8x8xf32> to vector<2x8xf32>
    %59 = vector.shape_cast %58 : vector<2x8xf32> to vector<2x8x1xf32>
    %60 = vector.broadcast %59 : vector<2x8x1xf32> to vector<2x8x8xf32>
    %61 = arith.subf %57, %60 : vector<2x8x8xf32>
    %62 = math.exp %61 : vector<2x8x8xf32>
    %cst_27 = arith.constant dense<0.000000e+00> : vector<2x8xf32>
    %63 = vector.multi_reduction <add>, %62, %cst_27 [2] : vector<2x8x8xf32> to vector<2x8xf32>
    %64 = vector.shape_cast %63 : vector<2x8xf32> to vector<2x8x1xf32>
    %65 = tpu.reciprocal %64 : vector<2x8x1xf32> -> vector<2x8x1xf32>
    %66 = vector.broadcast %65 : vector<2x8x1xf32> to vector<2x8x8xf32>
    %67 = arith.mulf %62, %66 : vector<2x8x8xf32>
    %68 = arith.cmpf one, %67, %67 : vector<2x8x8xf32>
    %cst_28 = arith.constant 0.000000e+00 : f32
    %69 = vector.broadcast %cst_28 : f32 to vector<2x8x8xf32>
    %70 = arith.select %68, %69, %67 : vector<2x8x8xi1>, vector<2x8x8xf32>
    %cst_29 = arith.constant 0.000000e+00 : f32
    %71 = vector.shape_cast %25 : vector<8x8xi1> to vector<1x8x8xi1>
    %72 = vector.broadcast %71 : vector<1x8x8xi1> to vector<2x8x8xi1>
    %73 = vector.broadcast %cst_29 : f32 to vector<2x8x8xf32>
    %74 = arith.select %72, %70, %73 : vector<2x8x8xi1>, vector<2x8x8xf32>
    "tpu.trace_start"() <{level = 10 : i32, message = "bqk,bkd->bqd"}> : () -> ()
    %cst_30 = arith.constant dense<0.000000e+00> : vector<2x8x8xf32>
    %75 = tpu.matmul %74, %53, %cst_30 {dimension_numbers = #tpu.dot_dimension_numbers<[2], [1], [1], [2], [0, 0, 0, 1, 1, 2], [0], [0]>} : vector<2x8x8xf32>, vector<2x8x8xf32>, vector<2x8x8xf32> -> vector<2x8x8xf32>
    "tpu.trace_stop"() : () -> ()
    %76 = vector.extract_strided_slice %17 {offsets = [0, 0, 16], sizes = [2, 8, 8], strides = [1, 1, 1]} : vector<2x8x32xf32> to vector<2x8x8xf32>
    %77 = vector.extract_strided_slice %18 {offsets = [0, 0, 16], sizes = [2, 8, 8], strides = [1, 1, 1]} : vector<2x8x32xf32> to vector<2x8x8xf32>
    %78 = vector.extract_strided_slice %22 {offsets = [0, 0, 16], sizes = [2, 8, 8], strides = [1, 1, 1]} : vector<2x8x32xf32> to vector<2x8x8xf32>
    "tpu.trace_start"() <{level = 10 : i32, message = "bqd,bkd->bqk"}> : () -> ()
    %cst_31 = arith.constant dense<0.000000e+00> : vector<2x8x8xf32>
    %79 = tpu.matmul %76, %77, %cst_31 {dimension_numbers = #tpu.dot_dimension_numbers<[2], [2], [1], [1], [0, 0, 0, 1, 1, 1], [0], [0]>} : vector<2x8x8xf32>, vector<2x8x8xf32>, vector<2x8x8xf32> -> vector<2x8x8xf32>
    "tpu.trace_stop"() : () -> ()
    %80 = arith.cmpf one, %79, %79 : vector<2x8x8xf32>
    %cst_32 = arith.constant 0xFF800000 : f32
    %81 = vector.broadcast %cst_32 : f32 to vector<2x8x8xf32>
    %82 = arith.select %80, %81, %79 : vector<2x8x8xi1>, vector<2x8x8xf32>
    %cst_33 = arith.constant dense<0xFF800000> : vector<2x8xf32>
    %83 = vector.multi_reduction <maximumf>, %82, %cst_33 [2] : vector<2x8x8xf32> to vector<2x8xf32>
    %84 = vector.shape_cast %83 : vector<2x8xf32> to vector<2x8x1xf32>
    %85 = vector.broadcast %84 : vector<2x8x1xf32> to vector<2x8x8xf32>
    %86 = arith.subf %82, %85 : vector<2x8x8xf32>
    %87 = math.exp %86 : vector<2x8x8xf32>
    %cst_34 = arith.constant dense<0.000000e+00> : vector<2x8xf32>
    %88 = vector.multi_reduction <add>, %87, %cst_34 [2] : vector<2x8x8xf32> to vector<2x8xf32>
    %89 = vector.shape_cast %88 : vector<2x8xf32> to vector<2x8x1xf32>
    %90 = tpu.reciprocal %89 : vector<2x8x1xf32> -> vector<2x8x1xf32>
    %91 = vector.broadcast %90 : vector<2x8x1xf32> to vector<2x8x8xf32>
    %92 = arith.mulf %87, %91 : vector<2x8x8xf32>
    %93 = arith.cmpf one, %92, %92 : vector<2x8x8xf32>
    %cst_35 = arith.constant 0.000000e+00 : f32
    %94 = vector.broadcast %cst_35 : f32 to vector<2x8x8xf32>
    %95 = arith.select %93, %94, %92 : vector<2x8x8xi1>, vector<2x8x8xf32>
    %cst_36 = arith.constant 0.000000e+00 : f32
    %96 = vector.shape_cast %25 : vector<8x8xi1> to vector<1x8x8xi1>
    %97 = vector.broadcast %96 : vector<1x8x8xi1> to vector<2x8x8xi1>
    %98 = vector.broadcast %cst_36 : f32 to vector<2x8x8xf32>
    %99 = arith.select %97, %95, %98 : vector<2x8x8xi1>, vector<2x8x8xf32>
    "tpu.trace_start"() <{level = 10 : i32, message = "bqk,bkd->bqd"}> : () -> ()
    %cst_37 = arith.constant dense<0.000000e+00> : vector<2x8x8xf32>
    %100 = tpu.matmul %99, %78, %cst_37 {dimension_numbers = #tpu.dot_dimension_numbers<[2], [1], [1], [2], [0, 0, 0, 1, 1, 2], [0], [0]>} : vector<2x8x8xf32>, vector<2x8x8xf32>, vector<2x8x8xf32> -> vector<2x8x8xf32>
    "tpu.trace_stop"() : () -> ()
    %101 = vector.extract_strided_slice %17 {offsets = [0, 0, 24], sizes = [2, 8, 8], strides = [1, 1, 1]} : vector<2x8x32xf32> to vector<2x8x8xf32>
    %102 = vector.extract_strided_slice %18 {offsets = [0, 0, 24], sizes = [2, 8, 8], strides = [1, 1, 1]} : vector<2x8x32xf32> to vector<2x8x8xf32>
    %103 = vector.extract_strided_slice %22 {offsets = [0, 0, 24], sizes = [2, 8, 8], strides = [1, 1, 1]} : vector<2x8x32xf32> to vector<2x8x8xf32>
    "tpu.trace_start"() <{level = 10 : i32, message = "bqd,bkd->bqk"}> : () -> ()
    %cst_38 = arith.constant dense<0.000000e+00> : vector<2x8x8xf32>
    %104 = tpu.matmul %101, %102, %cst_38 {dimension_numbers = #tpu.dot_dimension_numbers<[2], [2], [1], [1], [0, 0, 0, 1, 1, 1], [0], [0]>} : vector<2x8x8xf32>, vector<2x8x8xf32>, vector<2x8x8xf32> -> vector<2x8x8xf32>
    "tpu.trace_stop"() : () -> ()
    %105 = arith.cmpf one, %104, %104 : vector<2x8x8xf32>
    %cst_39 = arith.constant 0xFF800000 : f32
    %106 = vector.broadcast %cst_39 : f32 to vector<2x8x8xf32>
    %107 = arith.select %105, %106, %104 : vector<2x8x8xi1>, vector<2x8x8xf32>
    %cst_40 = arith.constant dense<0xFF800000> : vector<2x8xf32>
    %108 = vector.multi_reduction <maximumf>, %107, %cst_40 [2] : vector<2x8x8xf32> to vector<2x8xf32>
    %109 = vector.shape_cast %108 : vector<2x8xf32> to vector<2x8x1xf32>
    %110 = vector.broadcast %109 : vector<2x8x1xf32> to vector<2x8x8xf32>
    %111 = arith.subf %107, %110 : vector<2x8x8xf32>
    %112 = math.exp %111 : vector<2x8x8xf32>
    %cst_41 = arith.constant dense<0.000000e+00> : vector<2x8xf32>
    %113 = vector.multi_reduction <add>, %112, %cst_41 [2] : vector<2x8x8xf32> to vector<2x8xf32>
    %114 = vector.shape_cast %113 : vector<2x8xf32> to vector<2x8x1xf32>
    %115 = tpu.reciprocal %114 : vector<2x8x1xf32> -> vector<2x8x1xf32>
    %116 = vector.broadcast %115 : vector<2x8x1xf32> to vector<2x8x8xf32>
    %117 = arith.mulf %112, %116 : vector<2x8x8xf32>
    %118 = arith.cmpf one, %117, %117 : vector<2x8x8xf32>
    %cst_42 = arith.constant 0.000000e+00 : f32
    %119 = vector.broadcast %cst_42 : f32 to vector<2x8x8xf32>
    %120 = arith.select %118, %119, %117 : vector<2x8x8xi1>, vector<2x8x8xf32>
    %cst_43 = arith.constant 0.000000e+00 : f32
    %121 = vector.shape_cast %25 : vector<8x8xi1> to vector<1x8x8xi1>
    %122 = vector.broadcast %121 : vector<1x8x8xi1> to vector<2x8x8xi1>
    %123 = vector.broadcast %cst_43 : f32 to vector<2x8x8xf32>
    %124 = arith.select %122, %120, %123 : vector<2x8x8xi1>, vector<2x8x8xf32>
    "tpu.trace_start"() <{level = 10 : i32, message = "bqk,bkd->bqd"}> : () -> ()
    %cst_44 = arith.constant dense<0.000000e+00> : vector<2x8x8xf32>
    %125 = tpu.matmul %124, %103, %cst_44 {dimension_numbers = #tpu.dot_dimension_numbers<[2], [1], [1], [2], [0, 0, 0, 1, 1, 2], [0], [0]>} : vector<2x8x8xf32>, vector<2x8x8xf32>, vector<2x8x8xf32> -> vector<2x8x8xf32>
    "tpu.trace_stop"() : () -> ()
    %126 = vector.shape_cast %50 : vector<2x8x8xf32> to vector<2x2x32xf32>
    %127 = vector.shape_cast %75 : vector<2x8x8xf32> to vector<2x2x32xf32>
    %128 = vector.shape_cast %100 : vector<2x8x8xf32> to vector<2x2x32xf32>
    %129 = vector.shape_cast %125 : vector<2x8x8xf32> to vector<2x2x32xf32>
    %130 = tpu.concatenate %126, %127, %128, %129 in 1 : vector<2x2x32xf32>, vector<2x2x32xf32>, vector<2x2x32xf32>, vector<2x2x32xf32> -> vector<2x8x32xf32>
    %131 = arith.addf %0, %130 : vector<2x8x32xf32>
    %cst_45 = arith.constant dense<0.000000e+00> : vector<2x8xf32>
    %132 = vector.multi_reduction <add>, %131, %cst_45 [2] : vector<2x8x32xf32> to vector<2x8xf32>
    %133 = vector.shape_cast %132 : vector<2x8xf32> to vector<2x8x1xf32>
    %cst_46 = arith.constant 3.200000e+01 : f32
    %134 = vector.broadcast %cst_46 : f32 to vector<2x8x1xf32>
    %135 = arith.divf %133, %134 : vector<2x8x1xf32>
    %136 = vector.broadcast %135 : vector<2x8x1xf32> to vector<2x8x32xf32>
    %137 = arith.subf %131, %136 : vector<2x8x32xf32>
    %138 = arith.mulf %137, %137 : vector<2x8x32xf32>
    %cst_47 = arith.constant dense<0.000000e+00> : vector<2x8xf32>
    %139 = vector.multi_reduction <add>, %138, %cst_47 [2] : vector<2x8x32xf32> to vector<2x8xf32>
    %140 = vector.shape_cast %139 : vector<2x8xf32> to vector<2x8x1xf32>
    %cst_48 = arith.constant 3.200000e+01 : f32
    %141 = vector.broadcast %cst_48 : f32 to vector<2x8x1xf32>
    %142 = arith.divf %140, %141 : vector<2x8x1xf32>
    %cst_49 = arith.constant 9.99999974E-6 : f32
    %143 = vector.broadcast %cst_49 : f32 to vector<2x8x1xf32>
    %144 = arith.addf %142, %143 : vector<2x8x1xf32>
    %145 = math.rsqrt %144 : vector<2x8x1xf32>
    %146 = vector.broadcast %145 : vector<2x8x1xf32> to vector<2x8x32xf32>
    %147 = arith.mulf %137, %146 : vector<2x8x32xf32>
    %c0_50 = arith.constant 0 : index
    %c0_51 = arith.constant 0 : index
    %148 = vector.load %arg8[%c0_50, %c0_51] : memref<1x32xf32, #tpu.memory_space<vmem>>, vector<1x32xf32>
    %149 = vector.shape_cast %148 : vector<1x32xf32> to vector<1x1x32xf32>
    %150 = vector.broadcast %149 : vector<1x1x32xf32> to vector<2x8x32xf32>
    %151 = arith.mulf %147, %150 : vector<2x8x32xf32>
    %c0_52 = arith.constant 0 : index
    %c0_53 = arith.constant 0 : index
    %152 = vector.load %arg9[%c0_52, %c0_53] : memref<1x32xf32, #tpu.memory_space<vmem>>, vector<1x32xf32>
    %153 = vector.shape_cast %152 : vector<1x32xf32> to vector<1x1x32xf32>
    %154 = vector.broadcast %153 : vector<1x1x32xf32> to vector<2x8x32xf32>
    %155 = arith.addf %151, %154 : vector<2x8x32xf32>
    %c0_54 = arith.constant 0 : index
    %c0_55 = arith.constant 0 : index
    %c0_56 = arith.constant 0 : index
    %156 = vector.load %arg10[%c0_54, %c0_55, %c0_56] : memref<2x8x32xf32, #tpu.memory_space<vmem>>, vector<2x8x32xf32>
    tpu.vector_store %arg10[%c0_54, %c0_55, %c0_56], %155 {strides = array<i32>} : memref<2x8x32xf32, #tpu.memory_space<vmem>>, vector<2x8x32xf32>,
    return
  }
  func.func @transform_0(%arg0: i32) -> (i32, i32, i32) {
    %c0_i32 = arith.constant 0 : i32
    %c0_i32_0 = arith.constant 0 : i32
    %c0_i32_1 = arith.constant 0 : i32
    return %arg0, %c0_i32, %c0_i32_0 : i32, i32, i32
  }
  func.func @transform_1(%arg0: i32) -> (i32, i32) {
    %c0_i32 = arith.constant 0 : i32
    %c0_i32_0 = arith.constant 0 : i32
    %c0_i32_1 = arith.constant 0 : i32
    return %c0_i32, %c0_i32_0 : i32, i32
  }
  func.func @transform_2(%arg0: i32) -> (i32, i32) {
    %c0_i32 = arith.constant 0 : i32
    %c0_i32_0 = arith.constant 0 : i32
    %c0_i32_1 = arith.constant 0 : i32
    return %c0_i32, %c0_i32_0 : i32, i32
  }
  func.func @transform_3(%arg0: i32) -> (i32, i32) {
    %c0_i32 = arith.constant 0 : i32
    %c0_i32_0 = arith.constant 0 : i32
    %c0_i32_1 = arith.constant 0 : i32
    return %c0_i32, %c0_i32_0 : i32, i32
  }
  func.func @transform_4(%arg0: i32) -> (i32, i32) {
    %c0_i32 = arith.constant 0 : i32
    %c0_i32_0 = arith.constant 0 : i32
    %c0_i32_1 = arith.constant 0 : i32
    return %c0_i32, %c0_i32_0 : i32, i32
  }
  func.func @transform_5(%arg0: i32) -> (i32, i32) {
    %c0_i32 = arith.constant 0 : i32
    %c0_i32_0 = arith.constant 0 : i32
    %c0_i32_1 = arith.constant 0 : i32
    return %c0_i32, %c0_i32_0 : i32, i32
  }
  func.func @transform_6(%arg0: i32) -> (i32, i32) {
    %c0_i32 = arith.constant 0 : i32
    %c0_i32_0 = arith.constant 0 : i32
    %c0_i32_1 = arith.constant 0 : i32
    return %c0_i32, %c0_i32_0 : i32, i32
  }
  func.func @transform_7(%arg0: i32) -> (i32, i32) {
    %c0_i32 = arith.constant 0 : i32
    %c0_i32_0 = arith.constant 0 : i32
    %c0_i32_1 = arith.constant 0 : i32
    return %c0_i32, %c0_i32_0 : i32, i32
  }
  func.func @transform_8(%arg0: i32) -> (i32, i32) {
    %c0_i32 = arith.constant 0 : i32
    %c0_i32_0 = arith.constant 0 : i32
    %c0_i32_1 = arith.constant 0 : i32
    return %c0_i32, %c0_i32_0 : i32, i32
  }
  func.func @transform_9(%arg0: i32) -> (i32, i32, i32) {
    %c0_i32 = arith.constant 0 : i32
    %c0_i32_0 = arith.constant 0 : i32
    %c0_i32_1 = arith.constant 0 : i32
    return %arg0, %c0_i32, %c0_i32_0 : i32, i32, i32
  }
}

module attributes {stable_mosaic.version = 11 : i64} {
  func.func @_mha_fused_kernel(%arg0: i32, %arg1: memref<2x8x32xf32, #tpu.memory_space<vmem>>, %arg2: memref<32x32xf32, #tpu.memory_space<vmem>>, %arg3: memref<1x32xf32, #tpu.memory_space<vmem>>, %arg4: memref<32x32xf32, #tpu.memory_space<vmem>>, %arg5: memref<1x32xf32, #tpu.memory_space<vmem>>, %arg6: memref<32x32xf32, #tpu.memory_space<vmem>>, %arg7: memref<1x32xf32, #tpu.memory_space<vmem>>, %arg8: memref<1x32xf32, #tpu.memory_space<vmem>>, %arg9: memref<1x32xf32, #tpu.memory_space<vmem>>, %arg10: memref<2x8x32xf32, #tpu.memory_space<vmem>>, %arg11: memref<2x32x8xf32, #tpu.memory_space<vmem>>) attributes {dimension_semantics = [#tpu.dimension_semantics<parallel>], iteration_bounds = array<i64: 1>, scalar_prefetch = 0 : i64, scratch_operands = 1 : i64, tpu.core_type = #tpu.core_type<tc>, window_params = [{transform_indices = @transform_0, window_bounds = array<i64: 2, 8, 32>}, {pipeline_mode = #tpu.pipeline_mode<synchronous>, transform_indices = @transform_1, window_bounds = array<i64: 32, 32>}, {pipeline_mode = #tpu.pipeline_mode<synchronous>, transform_indices = @transform_2, window_bounds = array<i64: 1, 32>}, {pipeline_mode = #tpu.pipeline_mode<synchronous>, transform_indices = @transform_3, window_bounds = array<i64: 32, 32>}, {pipeline_mode = #tpu.pipeline_mode<synchronous>, transform_indices = @transform_4, window_bounds = array<i64: 1, 32>}, {pipeline_mode = #tpu.pipeline_mode<synchronous>, transform_indices = @transform_5, window_bounds = array<i64: 32, 32>}, {pipeline_mode = #tpu.pipeline_mode<synchronous>, transform_indices = @transform_6, window_bounds = array<i64: 1, 32>}, {pipeline_mode = #tpu.pipeline_mode<synchronous>, transform_indices = @transform_7, window_bounds = array<i64: 1, 32>}, {pipeline_mode = #tpu.pipeline_mode<synchronous>, transform_indices = @transform_8, window_bounds = array<i64: 1, 32>}, {transform_indices = @transform_9, window_bounds = array<i64: 2, 8, 32>}]} {
    %c0 = arith.constant 0 : index
    %c0_0 = arith.constant 0 : index
    %c0_1 = arith.constant 0 : index
    %0 = vector.load %arg1[%c0, %c0_0, %c0_1] : memref<2x8x32xf32, #tpu.memory_space<vmem>>, vector<2x8x32xf32>
    %1 = vector.shape_cast %0 : vector<2x8x32xf32> to vector<16x32xf32>
    %c0_2 = arith.constant 0 : index
    %c0_3 = arith.constant 0 : index
    %2 = vector.load %arg2[%c0_2, %c0_3] : memref<32x32xf32, #tpu.memory_space<vmem>>, vector<32x32xf32>
    %cst = arith.constant dense<0.000000e+00> : vector<16x32xf32>
    %3 = tpu.matmul %1, %2, %cst {dimension_numbers = #tpu.dot_dimension_numbers<[1], [0], [0], [1], [0, 0, 1, 1], [], []>} : vector<16x32xf32>, vector<32x32xf32>, vector<16x32xf32> -> vector<16x32xf32>
    %c0_4 = arith.constant 0 : index
    %c0_5 = arith.constant 0 : index
    %4 = vector.load %arg3[%c0_4, %c0_5] : memref<1x32xf32, #tpu.memory_space<vmem>>, vector<1x32xf32>
    %5 = vector.broadcast %4 : vector<1x32xf32> to vector<16x32xf32>
    %6 = arith.addf %3, %5 : vector<16x32xf32>
    %c0_6 = arith.constant 0 : index
    %c0_7 = arith.constant 0 : index
    %7 = vector.load %arg4[%c0_6, %c0_7] : memref<32x32xf32, #tpu.memory_space<vmem>>, vector<32x32xf32>
    %cst_8 = arith.constant dense<0.000000e+00> : vector<16x32xf32>
    %8 = tpu.matmul %1, %7, %cst_8 {dimension_numbers = #tpu.dot_dimension_numbers<[1], [0], [0], [1], [0, 0, 1, 1], [], []>} : vector<16x32xf32>, vector<32x32xf32>, vector<16x32xf32> -> vector<16x32xf32>
    %c0_9 = arith.constant 0 : index
    %c0_10 = arith.constant 0 : index
    %9 = vector.load %arg5[%c0_9, %c0_10] : memref<1x32xf32, #tpu.memory_space<vmem>>, vector<1x32xf32>
    %10 = vector.broadcast %9 : vector<1x32xf32> to vector<16x32xf32>
    %11 = arith.addf %8, %10 : vector<16x32xf32>
    %c0_11 = arith.constant 0 : index
    %c0_12 = arith.constant 0 : index
    %12 = vector.load %arg6[%c0_11, %c0_12] : memref<32x32xf32, #tpu.memory_space<vmem>>, vector<32x32xf32>
    %cst_13 = arith.constant dense<0.000000e+00> : vector<16x32xf32>
    %13 = tpu.matmul %1, %12, %cst_13 {dimension_numbers = #tpu.dot_dimension_numbers<[1], [0], [0], [1], [0, 0, 1, 1], [], []>} : vector<16x32xf32>, vector<32x32xf32>, vector<16x32xf32> -> vector<16x32xf32>
    %c0_14 = arith.constant 0 : index
    %c0_15 = arith.constant 0 : index
    %14 = vector.load %arg7[%c0_14, %c0_15] : memref<1x32xf32, #tpu.memory_space<vmem>>, vector<1x32xf32>
    %15 = vector.broadcast %14 : vector<1x32xf32> to vector<16x32xf32>
    %16 = arith.addf %13, %15 : vector<16x32xf32>
    %17 = vector.shape_cast %6 : vector<16x32xf32> to vector<2x8x32xf32>
    %18 = vector.shape_cast %11 : vector<16x32xf32> to vector<2x8x32xf32>
    %19 = arith.cmpf one, %16, %16 : vector<16x32xf32>
    %cst_16 = arith.constant 0.000000e+00 : f32
    %20 = vector.broadcast %cst_16 : f32 to vector<16x32xf32>
    %21 = arith.select %19, %20, %16 : vector<16x32xi1>, vector<16x32xf32>
    %22 = vector.shape_cast %21 : vector<16x32xf32> to vector<2x8x32xf32>
    %23 = tpu.iota {dimensions = array<i32: 0>} : vector<8x8xi32>
    %24 = tpu.iota {dimensions = array<i32: 1>} : vector<8x8xi32>
    %25 = arith.cmpi sge, %24, %23 : vector<8x8xi32>
    %26 = vector.extract_strided_slice %17 {offsets = [0, 0, 0], sizes = [2, 8, 8], strides = [1, 1, 1]} : vector<2x8x32xf32> to vector<2x8x8xf32>
    %27 = vector.extract_strided_slice %18 {offsets = [0, 0, 0], sizes = [2, 8, 8], strides = [1, 1, 1]} : vector<2x8x32xf32> to vector<2x8x8xf32>
    %28 = vector.extract_strided_slice %22 {offsets = [0, 0, 0], sizes = [2, 8, 8], strides = [1, 1, 1]} : vector<2x8x32xf32> to vector<2x8x8xf32>
    "tpu.trace_start"() <{level = 10 : i32, message = "bqd,bkd->bqk"}> : () -> ()
    %cst_17 = arith.constant dense<0.000000e+00> : vector<2x8x8xf32>
    %29 = tpu.matmul %26, %27, %cst_17 {dimension_numbers = #tpu.dot_dimension_numbers<[2], [2], [1], [1], [0, 0, 0, 1, 1, 1], [0], [0]>} : vector<2x8x8xf32>, vector<2x8x8xf32>, vector<2x8x8xf32> -> vector<2x8x8xf32>
    "tpu.trace_stop"() : () -> ()
    %30 = arith.cmpf one, %29, %29 : vector<2x8x8xf32>
    %cst_18 = arith.constant 0xFF800000 : f32
    %31 = vector.broadcast %cst_18 : f32 to vector<2x8x8xf32>
    %32 = arith.select %30, %31, %29 : vector<2x8x8xi1>, vector<2x8x8xf32>
    %cst_19 = arith.constant dense<0xFF800000> : vector<2x8xf32>
    %33 = vector.multi_reduction <maximumf>, %32, %cst_19 [2] : vector<2x8x8xf32> to vector<2x8xf32>
    %34 = vector.shape_cast %33 : vector<2x8xf32> to vector<2x8x1xf32>
    %35 = vector.broadcast %34 : vector<2x8x1xf32> to vector<2x8x8xf32>
    %36 = arith.subf %32, %35 : vector<2x8x8xf32>
    %37 = math.exp %36 : vector<2x8x8xf32>
    %cst_20 = arith.constant dense<0.000000e+00> : vector<2x8xf32>
    %38 = vector.multi_reduction <add>, %37, %cst_20 [2] : vector<2x8x8xf32> to vector<2x8xf32>
    %39 = vector.shape_cast %38 : vector<2x8xf32> to vector<2x8x1xf32>
    %40 = tpu.reciprocal %39 : vector<2x8x1xf32> -> vector<2x8x1xf32>
    %41 = vector.broadcast %40 : vector<2x8x1xf32> to vector<2x8x8xf32>
    %42 = arith.mulf %37, %41 : vector<2x8x8xf32>
    %43 = arith.cmpf one, %42, %42 : vector<2x8x8xf32>
    %cst_21 = arith.constant 0.000000e+00 : f32
    %44 = vector.broadcast %cst_21 : f32 to vector<2x8x8xf32>
    %45 = arith.select %43, %44, %42 : vector<2x8x8xi1>, vector<2x8x8xf32>
    %cst_22 = arith.constant 0.000000e+00 : f32
    %46 = vector.shape_cast %25 : vector<8x8xi1> to vector<1x8x8xi1>
    %47 = vector.broadcast %46 : vector<1x8x8xi1> to vector<2x8x8xi1>
    %48 = vector.broadcast %cst_22 : f32 to vector<2x8x8xf32>
    %49 = arith.select %47, %45, %48 : vector<2x8x8xi1>, vector<2x8x8xf32>
    "tpu.trace_start"() <{level = 10 : i32, message = "bqk,bkd->bqd"}> : () -> ()
    %cst_23 = arith.constant dense<0.000000e+00> : vector<2x8x8xf32>
    %50 = tpu.matmul %49, %28, %cst_23 {dimension_numbers = #tpu.dot_dimension_numbers<[2], [1], [1], [2], [0, 0, 0, 1, 1, 2], [0], [0]>} : vector<2x8x8xf32>, vector<2x8x8xf32>, vector<2x8x8xf32> -> vector<2x8x8xf32>
    "tpu.trace_stop"() : () -> ()
    %51 = vector.extract_strided_slice %17 {offsets = [0, 0, 8], sizes = [2, 8, 8], strides = [1, 1, 1]} : vector<2x8x32xf32> to vector<2x8x8xf32>
    %52 = vector.extract_strided_slice %18 {offsets = [0, 0, 8], sizes = [2, 8, 8], strides = [1, 1, 1]} : vector<2x8x32xf32> to vector<2x8x8xf32>
    %53 = vector.extract_strided_slice %22 {offsets = [0, 0, 8], sizes = [2, 8, 8], strides = [1, 1, 1]} : vector<2x8x32xf32> to vector<2x8x8xf32>
    "tpu.trace_start"() <{level = 10 : i32, message = "bqd,bkd->bqk"}> : () -> ()
    %cst_24 = arith.constant dense<0.000000e+00> : vector<2x8x8xf32>
    %54 = tpu.matmul %51, %52, %cst_24 {dimension_numbers = #tpu.dot_dimension_numbers<[2], [2], [1], [1], [0, 0, 0, 1, 1, 1], [0], [0]>} : vector<2x8x8xf32>, vector<2x8x8xf32>, vector<2x8x8xf32> -> vector<2x8x8xf32>
    "tpu.trace_stop"() : () -> ()
    %55 = arith.cmpf one, %54, %54 : vector<2x8x8xf32>
    %cst_25 = arith.constant 0xFF800000 : f32
    %56 = vector.broadcast %cst_25 : f32 to vector<2x8x8xf32>
    %57 = arith.select %55, %56, %54 : vector<2x8x8xi1>, vector<2x8x8xf32>
    %cst_26 = arith.constant dense<0xFF800000> : vector<2x8xf32>
    %58 = vector.multi_reduction <maximumf>, %57, %cst_26 [2] : vector<2x8x8xf32> to vector<2x8xf32>
    %59 = vector.shape_cast %58 : vector<2x8xf32> to vector<2x8x1xf32>
    %60 = vector.broadcast %59 : vector<2x8x1xf32> to vector<2x8x8xf32>
    %61 = arith.subf %57, %60 : vector<2x8x8xf32>
    %62 = math.exp %61 : vector<2x8x8xf32>
    %cst_27 = arith.constant dense<0.000000e+00> : vector<2x8xf32>
    %63 = vector.multi_reduction <add>, %62, %cst_27 [2] : vector<2x8x8xf32> to vector<2x8xf32>
    %64 = vector.shape_cast %63 : vector<2x8xf32> to vector<2x8x1xf32>
    %65 = tpu.reciprocal %64 : vector<2x8x1xf32> -> vector<2x8x1xf32>
    %66 = vector.broadcast %65 : vector<2x8x1xf32> to vector<2x8x8xf32>
    %67 = arith.mulf %62, %66 : vector<2x8x8xf32>
    %68 = arith.cmpf one, %67, %67 : vector<2x8x8xf32>
    %cst_28 = arith.constant 0.000000e+00 : f32
    %69 = vector.broadcast %cst_28 : f32 to vector<2x8x8xf32>
    %70 = arith.select %68, %69, %67 : vector<2x8x8xi1>, vector<2x8x8xf32>
    %cst_29 = arith.constant 0.000000e+00 : f32
    %71 = vector.shape_cast %25 : vector<8x8xi1> to vector<1x8x8xi1>
    %72 = vector.broadcast %71 : vector<1x8x8xi1> to vector<2x8x8xi1>
    %73 = vector.broadcast %cst_29 : f32 to vector<2x8x8xf32>
    %74 = arith.select %72, %70, %73 : vector<2x8x8xi1>, vector<2x8x8xf32>
    "tpu.trace_start"() <{level = 10 : i32, message = "bqk,bkd->bqd"}> : () -> ()
    %cst_30 = arith.constant dense<0.000000e+00> : vector<2x8x8xf32>
    %75 = tpu.matmul %74, %53, %cst_30 {dimension_numbers = #tpu.dot_dimension_numbers<[2], [1], [1], [2], [0, 0, 0, 1, 1, 2], [0], [0]>} : vector<2x8x8xf32>, vector<2x8x8xf32>, vector<2x8x8xf32> -> vector<2x8x8xf32>
    "tpu.trace_stop"() : () -> ()
    %76 = vector.extract_strided_slice %17 {offsets = [0, 0, 16], sizes = [2, 8, 8], strides = [1, 1, 1]} : vector<2x8x32xf32> to vector<2x8x8xf32>
    %77 = vector.extract_strided_slice %18 {offsets = [0, 0, 16], sizes = [2, 8, 8], strides = [1, 1, 1]} : vector<2x8x32xf32> to vector<2x8x8xf32>
    %78 = vector.extract_strided_slice %22 {offsets = [0, 0, 16], sizes = [2, 8, 8], strides = [1, 1, 1]} : vector<2x8x32xf32> to vector<2x8x8xf32>
    "tpu.trace_start"() <{level = 10 : i32, message = "bqd,bkd->bqk"}> : () -> ()
    %cst_31 = arith.constant dense<0.000000e+00> : vector<2x8x8xf32>
    %79 = tpu.matmul %76, %77, %cst_31 {dimension_numbers = #tpu.dot_dimension_numbers<[2], [2], [1], [1], [0, 0, 0, 1, 1, 1], [0], [0]>} : vector<2x8x8xf32>, vector<2x8x8xf32>, vector<2x8x8xf32> -> vector<2x8x8xf32>
    "tpu.trace_stop"() : () -> ()
    %80 = arith.cmpf one, %79, %79 : vector<2x8x8xf32>
    %cst_32 = arith.constant 0xFF800000 : f32
    %81 = vector.broadcast %cst_32 : f32 to vector<2x8x8xf32>
    %82 = arith.select %80, %81, %79 : vector<2x8x8xi1>, vector<2x8x8xf32>
    %cst_33 = arith.constant dense<0xFF800000> : vector<2x8xf32>
    %83 = vector.multi_reduction <maximumf>, %82, %cst_33 [2] : vector<2x8x8xf32> to vector<2x8xf32>
    %84 = vector.shape_cast %83 : vector<2x8xf32> to vector<2x8x1xf32>
    %85 = vector.broadcast %84 : vector<2x8x1xf32> to vector<2x8x8xf32>
    %86 = arith.subf %82, %85 : vector<2x8x8xf32>
    %87 = math.exp %86 : vector<2x8x8xf32>
    %cst_34 = arith.constant dense<0.000000e+00> : vector<2x8xf32>
    %88 = vector.multi_reduction <add>, %87, %cst_34 [2] : vector<2x8x8xf32> to vector<2x8xf32>
    %89 = vector.shape_cast %88 : vector<2x8xf32> to vector<2x8x1xf32>
    %90 = tpu.reciprocal %89 : vector<2x8x1xf32> -> vector<2x8x1xf32>
    %91 = vector.broadcast %90 : vector<2x8x1xf32> to vector<2x8x8xf32>
    %92 = arith.mulf %87, %91 : vector<2x8x8xf32>
    %93 = arith.cmpf one, %92, %92 : vector<2x8x8xf32>
    %cst_35 = arith.constant 0.000000e+00 : f32
    %94 = vector.broadcast %cst_35 : f32 to vector<2x8x8xf32>
    %95 = arith.select %93, %94, %92 : vector<2x8x8xi1>, vector<2x8x8xf32>
    %cst_36 = arith.constant 0.000000e+00 : f32
    %96 = vector.shape_cast %25 : vector<8x8xi1> to vector<1x8x8xi1>
    %97 = vector.broadcast %96 : vector<1x8x8xi1> to vector<2x8x8xi1>
    %98 = vector.broadcast %cst_36 : f32 to vector<2x8x8xf32>
    %99 = arith.select %97, %95, %98 : vector<2x8x8xi1>, vector<2x8x8xf32>
    "tpu.trace_start"() <{level = 10 : i32, message = "bqk,bkd->bqd"}> : () -> ()
    %cst_37 = arith.constant dense<0.000000e+00> : vector<2x8x8xf32>
    %100 = tpu.matmul %99, %78, %cst_37 {dimension_numbers = #tpu.dot_dimension_numbers<[2], [1], [1], [2], [0, 0, 0, 1, 1, 2], [0], [0]>} : vector<2x8x8xf32>, vector<2x8x8xf32>, vector<2x8x8xf32> -> vector<2x8x8xf32>
    "tpu.trace_stop"() : () -> ()
    %101 = vector.extract_strided_slice %17 {offsets = [0, 0, 24], sizes = [2, 8, 8], strides = [1, 1, 1]} : vector<2x8x32xf32> to vector<2x8x8xf32>
    %102 = vector.extract_strided_slice %18 {offsets = [0, 0, 24], sizes = [2, 8, 8], strides = [1, 1, 1]} : vector<2x8x32xf32> to vector<2x8x8xf32>
    %103 = vector.extract_strided_slice %22 {offsets = [0, 0, 24], sizes = [2, 8, 8], strides = [1, 1, 1]} : vector<2x8x32xf32> to vector<2x8x8xf32>
    "tpu.trace_start"() <{level = 10 : i32, message = "bqd,bkd->bqk"}> : () -> ()
    %cst_38 = arith.constant dense<0.000000e+00> : vector<2x8x8xf32>
    %104 = tpu.matmul %101, %102, %cst_38 {dimension_numbers = #tpu.dot_dimension_numbers<[2], [2], [1], [1], [0, 0, 0, 1, 1, 1], [0], [0]>} : vector<2x8x8xf32>, vector<2x8x8xf32>, vector<2x8x8xf32> -> vector<2x8x8xf32>
    "tpu.trace_stop"() : () -> ()
    %105 = arith.cmpf one, %104, %104 : vector<2x8x8xf32>
    %cst_39 = arith.constant 0xFF800000 : f32
    %106 = vector.broadcast %cst_39 : f32 to vector<2x8x8xf32>
    %107 = arith.select %105, %106, %104 : vector<2x8x8xi1>, vector<2x8x8xf32>
    %cst_40 = arith.constant dense<0xFF800000> : vector<2x8xf32>
    %108 = vector.multi_reduction <maximumf>, %107, %cst_40 [2] : vector<2x8x8xf32> to vector<2x8xf32>
    %109 = vector.shape_cast %108 : vector<2x8xf32> to vector<2x8x1xf32>
    %110 = vector.broadcast %109 : vector<2x8x1xf32> to vector<2x8x8xf32>
    %111 = arith.subf %107, %110 : vector<2x8x8xf32>
    %112 = math.exp %111 : vector<2x8x8xf32>
    %cst_41 = arith.constant dense<0.000000e+00> : vector<2x8xf32>
    %113 = vector.multi_reduction <add>, %112, %cst_41 [2] : vector<2x8x8xf32> to vector<2x8xf32>
    %114 = vector.shape_cast %113 : vector<2x8xf32> to vector<2x8x1xf32>
    %115 = tpu.reciprocal %114 : vector<2x8x1xf32> -> vector<2x8x1xf32>
    %116 = vector.broadcast %115 : vector<2x8x1xf32> to vector<2x8x8xf32>
    %117 = arith.mulf %112, %116 : vector<2x8x8xf32>
    %118 = arith.cmpf one, %117, %117 : vector<2x8x8xf32>
    %cst_42 = arith.constant 0.000000e+00 : f32
    %119 = vector.broadcast %cst_42 : f32 to vector<2x8x8xf32>
    %120 = arith.select %118, %119, %117 : vector<2x8x8xi1>, vector<2x8x8xf32>
    %cst_43 = arith.constant 0.000000e+00 : f32
    %121 = vector.shape_cast %25 : vector<8x8xi1> to vector<1x8x8xi1>
    %122 = vector.broadcast %121 : vector<1x8x8xi1> to vector<2x8x8xi1>
    %123 = vector.broadcast %cst_43 : f32 to vector<2x8x8xf32>
    %124 = arith.select %122, %120, %123 : vector<2x8x8xi1>, vector<2x8x8xf32>
    "tpu.trace_start"() <{level = 10 : i32, message = "bqk,bkd->bqd"}> : () -> ()
    %cst_44 = arith.constant dense<0.000000e+00> : vector<2x8x8xf32>
    %125 = tpu.matmul %124, %103, %cst_44 {dimension_numbers = #tpu.dot_dimension_numbers<[2], [1], [1], [2], [0, 0, 0, 1, 1, 2], [0], [0]>} : vector<2x8x8xf32>, vector<2x8x8xf32>, vector<2x8x8xf32> -> vector<2x8x8xf32>
    "tpu.trace_stop"() : () -> ()
    %c0_45 = arith.constant 0 : index
    %c0_46 = arith.constant 0 : index
    %c0_47 = arith.constant 0 : index
    %126 = vector.load %arg11[%c0_45, %c0_46, %c0_47] : memref<2x32x8xf32, #tpu.memory_space<vmem>>, vector<2x8x8xf32>
    tpu.vector_store %arg11[%c0_45, %c0_46, %c0_47], %50 {strides = array<i32>} : memref<2x32x8xf32, #tpu.memory_space<vmem>>, vector<2x8x8xf32>,
    %c0_48 = arith.constant 0 : index
    %c8 = arith.constant 8 : index
    %c0_49 = arith.constant 0 : index
    %127 = vector.load %arg11[%c0_48, %c8, %c0_49] : memref<2x32x8xf32, #tpu.memory_space<vmem>>, vector<2x8x8xf32>
    tpu.vector_store %arg11[%c0_48, %c8, %c0_49], %75 {strides = array<i32>} : memref<2x32x8xf32, #tpu.memory_space<vmem>>, vector<2x8x8xf32>,
    %c0_50 = arith.constant 0 : index
    %c16 = arith.constant 16 : index
    %c0_51 = arith.constant 0 : index
    %128 = vector.load %arg11[%c0_50, %c16, %c0_51] : memref<2x32x8xf32, #tpu.memory_space<vmem>>, vector<2x8x8xf32>
    tpu.vector_store %arg11[%c0_50, %c16, %c0_51], %100 {strides = array<i32>} : memref<2x32x8xf32, #tpu.memory_space<vmem>>, vector<2x8x8xf32>,
    %c0_52 = arith.constant 0 : index
    %c24 = arith.constant 24 : index
    %c0_53 = arith.constant 0 : index
    %129 = vector.load %arg11[%c0_52, %c24, %c0_53] : memref<2x32x8xf32, #tpu.memory_space<vmem>>, vector<2x8x8xf32>
    tpu.vector_store %arg11[%c0_52, %c24, %c0_53], %125 {strides = array<i32>} : memref<2x32x8xf32, #tpu.memory_space<vmem>>, vector<2x8x8xf32>,
    %c0_54 = arith.constant 0 : index
    %c0_55 = arith.constant 0 : index
    %c0_56 = arith.constant 0 : index
    %130 = tpu.strided_load %arg11[%c0_54, %c0_55, %c0_56] {strides = array<i32: 1, 4, 1>} : memref<2x32x8xf32, #tpu.memory_space<vmem>>, vector<1x8x8xf32>
    %131 = vector.shape_cast %130 : vector<1x8x8xf32> to vector<8x8xf32>
    %c0_57 = arith.constant 0 : index
    %c1 = arith.constant 1 : index
    %c0_58 = arith.constant 0 : index
    %132 = tpu.strided_load %arg11[%c0_57, %c1, %c0_58] {strides = array<i32: 1, 4, 1>} : memref<2x32x8xf32, #tpu.memory_space<vmem>>, vector<1x8x8xf32>
    %133 = vector.shape_cast %132 : vector<1x8x8xf32> to vector<8x8xf32>
    %c0_59 = arith.constant 0 : index
    %c2 = arith.constant 2 : index
    %c0_60 = arith.constant 0 : index
    %134 = tpu.strided_load %arg11[%c0_59, %c2, %c0_60] {strides = array<i32: 1, 4, 1>} : memref<2x32x8xf32, #tpu.memory_space<vmem>>, vector<1x8x8xf32>
    %135 = vector.shape_cast %134 : vector<1x8x8xf32> to vector<8x8xf32>
    %c0_61 = arith.constant 0 : index
    %c3 = arith.constant 3 : index
    %c0_62 = arith.constant 0 : index
    %136 = tpu.strided_load %arg11[%c0_61, %c3, %c0_62] {strides = array<i32: 1, 4, 1>} : memref<2x32x8xf32, #tpu.memory_space<vmem>>, vector<1x8x8xf32>
    %137 = vector.shape_cast %136 : vector<1x8x8xf32> to vector<8x8xf32>
    %138 = tpu.concatenate %131, %133, %135, %137 in 1 : vector<8x8xf32>, vector<8x8xf32>, vector<8x8xf32>, vector<8x8xf32> -> vector<8x32xf32>
    %c1_63 = arith.constant 1 : index
    %c0_64 = arith.constant 0 : index
    %c0_65 = arith.constant 0 : index
    %139 = tpu.strided_load %arg11[%c1_63, %c0_64, %c0_65] {strides = array<i32: 1, 4, 1>} : memref<2x32x8xf32, #tpu.memory_space<vmem>>, vector<1x8x8xf32>
    %140 = vector.shape_cast %139 : vector<1x8x8xf32> to vector<8x8xf32>
    %c1_66 = arith.constant 1 : index
    %c1_67 = arith.constant 1 : index
    %c0_68 = arith.constant 0 : index
    %141 = tpu.strided_load %arg11[%c1_66, %c1_67, %c0_68] {strides = array<i32: 1, 4, 1>} : memref<2x32x8xf32, #tpu.memory_space<vmem>>, vector<1x8x8xf32>
    %142 = vector.shape_cast %141 : vector<1x8x8xf32> to vector<8x8xf32>
    %c1_69 = arith.constant 1 : index
    %c2_70 = arith.constant 2 : index
    %c0_71 = arith.constant 0 : index
    %143 = tpu.strided_load %arg11[%c1_69, %c2_70, %c0_71] {strides = array<i32: 1, 4, 1>} : memref<2x32x8xf32, #tpu.memory_space<vmem>>, vector<1x8x8xf32>
    %144 = vector.shape_cast %143 : vector<1x8x8xf32> to vector<8x8xf32>
    %c1_72 = arith.constant 1 : index
    %c3_73 = arith.constant 3 : index
    %c0_74 = arith.constant 0 : index
    %145 = tpu.strided_load %arg11[%c1_72, %c3_73, %c0_74] {strides = array<i32: 1, 4, 1>} : memref<2x32x8xf32, #tpu.memory_space<vmem>>, vector<1x8x8xf32>
    %146 = vector.shape_cast %145 : vector<1x8x8xf32> to vector<8x8xf32>
    %147 = tpu.concatenate %140, %142, %144, %146 in 1 : vector<8x8xf32>, vector<8x8xf32>, vector<8x8xf32>, vector<8x8xf32> -> vector<8x32xf32>
    %148 = vector.shape_cast %138 : vector<8x32xf32> to vector<1x8x32xf32>
    %149 = vector.shape_cast %147 : vector<8x32xf32> to vector<1x8x32xf32>
    %150 = tpu.concatenate %148, %149 in 0 : vector<1x8x32xf32>, vector<1x8x32xf32> -> vector<2x8x32xf32>
    %151 = arith.addf %0, %150 : vector<2x8x32xf32>
    %cst_75 = arith.constant dense<0.000000e+00> : vector<2x8xf32>
    %152 = vector.multi_reduction <add>, %151, %cst_75 [2] : vector<2x8x32xf32> to vector<2x8xf32>
    %153 = vector.shape_cast %152 : vector<2x8xf32> to vector<2x8x1xf32>
    %cst_76 = arith.constant 3.200000e+01 : f32
    %154 = vector.broadcast %cst_76 : f32 to vector<2x8x1xf32>
    %155 = arith.divf %153, %154 : vector<2x8x1xf32>
    %156 = vector.broadcast %155 : vector<2x8x1xf32> to vector<2x8x32xf32>
    %157 = arith.subf %151, %156 : vector<2x8x32xf32>
    %158 = arith.mulf %157, %157 : vector<2x8x32xf32>
    %cst_77 = arith.constant dense<0.000000e+00> : vector<2x8xf32>
    %159 = vector.multi_reduction <add>, %158, %cst_77 [2] : vector<2x8x32xf32> to vector<2x8xf32>
    %160 = vector.shape_cast %159 : vector<2x8xf32> to vector<2x8x1xf32>
    %cst_78 = arith.constant 3.200000e+01 : f32
    %161 = vector.broadcast %cst_78 : f32 to vector<2x8x1xf32>
    %162 = arith.divf %160, %161 : vector<2x8x1xf32>
    %cst_79 = arith.constant 9.99999974E-6 : f32
    %163 = vector.broadcast %cst_79 : f32 to vector<2x8x1xf32>
    %164 = arith.addf %162, %163 : vector<2x8x1xf32>
    %165 = math.rsqrt %164 : vector<2x8x1xf32>
    %166 = vector.broadcast %165 : vector<2x8x1xf32> to vector<2x8x32xf32>
    %167 = arith.mulf %157, %166 : vector<2x8x32xf32>
    %c0_80 = arith.constant 0 : index
    %c0_81 = arith.constant 0 : index
    %168 = vector.load %arg8[%c0_80, %c0_81] : memref<1x32xf32, #tpu.memory_space<vmem>>, vector<1x32xf32>
    %169 = vector.shape_cast %168 : vector<1x32xf32> to vector<1x1x32xf32>
    %170 = vector.broadcast %169 : vector<1x1x32xf32> to vector<2x8x32xf32>
    %171 = arith.mulf %167, %170 : vector<2x8x32xf32>
    %c0_82 = arith.constant 0 : index
    %c0_83 = arith.constant 0 : index
    %172 = vector.load %arg9[%c0_82, %c0_83] : memref<1x32xf32, #tpu.memory_space<vmem>>, vector<1x32xf32>
    %173 = vector.shape_cast %172 : vector<1x32xf32> to vector<1x1x32xf32>
    %174 = vector.broadcast %173 : vector<1x1x32xf32> to vector<2x8x32xf32>
    %175 = arith.addf %171, %174 : vector<2x8x32xf32>
    %c0_84 = arith.constant 0 : index
    %c0_85 = arith.constant 0 : index
    %c0_86 = arith.constant 0 : index
    %176 = vector.load %arg10[%c0_84, %c0_85, %c0_86] : memref<2x8x32xf32, #tpu.memory_space<vmem>>, vector<2x8x32xf32>
    tpu.vector_store %arg10[%c0_84, %c0_85, %c0_86], %175 {strides = array<i32>} : memref<2x8x32xf32, #tpu.memory_space<vmem>>, vector<2x8x32xf32>,
    return
  }
  func.func @transform_0(%arg0: i32) -> (i32, i32, i32) {
    %c0_i32 = arith.constant 0 : i32
    %c0_i32_0 = arith.constant 0 : i32
    %c0_i32_1 = arith.constant 0 : i32
    return %arg0, %c0_i32, %c0_i32_0 : i32, i32, i32
  }
  func.func @transform_1(%arg0: i32) -> (i32, i32) {
    %c0_i32 = arith.constant 0 : i32
    %c0_i32_0 = arith.constant 0 : i32
    %c0_i32_1 = arith.constant 0 : i32
    return %c0_i32, %c0_i32_0 : i32, i32
  }
  func.func @transform_2(%arg0: i32) -> (i32, i32) {
    %c0_i32 = arith.constant 0 : i32
    %c0_i32_0 = arith.constant 0 : i32
    %c0_i32_1 = arith.constant 0 : i32
    return %c0_i32, %c0_i32_0 : i32, i32
  }
  func.func @transform_3(%arg0: i32) -> (i32, i32) {
    %c0_i32 = arith.constant 0 : i32
    %c0_i32_0 = arith.constant 0 : i32
    %c0_i32_1 = arith.constant 0 : i32
    return %c0_i32, %c0_i32_0 : i32, i32
  }
  func.func @transform_4(%arg0: i32) -> (i32, i32) {
    %c0_i32 = arith.constant 0 : i32
    %c0_i32_0 = arith.constant 0 : i32
    %c0_i32_1 = arith.constant 0 : i32
    return %c0_i32, %c0_i32_0 : i32, i32
  }
  func.func @transform_5(%arg0: i32) -> (i32, i32) {
    %c0_i32 = arith.constant 0 : i32
    %c0_i32_0 = arith.constant 0 : i32
    %c0_i32_1 = arith.constant 0 : i32
    return %c0_i32, %c0_i32_0 : i32, i32
  }
  func.func @transform_6(%arg0: i32) -> (i32, i32) {
    %c0_i32 = arith.constant 0 : i32
    %c0_i32_0 = arith.constant 0 : i32
    %c0_i32_1 = arith.constant 0 : i32
    return %c0_i32, %c0_i32_0 : i32, i32
  }
  func.func @transform_7(%arg0: i32) -> (i32, i32) {
    %c0_i32 = arith.constant 0 : i32
    %c0_i32_0 = arith.constant 0 : i32
    %c0_i32_1 = arith.constant 0 : i32
    return %c0_i32, %c0_i32_0 : i32, i32
  }
  func.func @transform_8(%arg0: i32) -> (i32, i32) {
    %c0_i32 = arith.constant 0 : i32
    %c0_i32_0 = arith.constant 0 : i32
    %c0_i32_1 = arith.constant 0 : i32
    return %c0_i32, %c0_i32_0 : i32, i32
  }
  func.func @transform_9(%arg0: i32) -> (i32, i32, i32) {
    %c0_i32 = arith.constant 0 : i32
    %c0_i32_0 = arith.constant 0 : i32
    %c0_i32_1 = arith.constant 0 : i32
    return %arg0, %c0_i32, %c0_i32_0 : i32, i32, i32
  }
}

</mosaic_0001>

<bundles_post_ra>
// kernel: tpu_custom_call.1
= control target key start
LH: loop header
LB: loop body
LE: loop exit
PB: predicated region body
PF: predicated region fallthrough
CT: control target
= control target key end

     0   :  { %14 = vsyncpa [#allocation4], 0  ;;  %s1504_s0 = inlined_call_operand.hbm [shape: f32[2,8,32], index: 0, kind: input, shape index: {}]   ;;  %s1505_s1 = inlined_call_operand.hbm [shape: f32[32,32], index: 1, kind: input, shape index: {}]   ;;  %s1506_s2 = inlined_call_operand.vmem [shape: f32[1,32], index: 2, kind: input, shape index: {}]   ;;  %s1507_s3 = inlined_call_operand.hbm [shape: f32[32,32], index: 3, kind: input, shape index: {}]   ;;  %s1508_s4 = inlined_call_operand.vmem [shape: f32[1,32], index: 4, kind: input, shape index: {}]   ;;  %s1509_s5 = inlined_call_operand.hbm [shape: f32[32,32], index: 5, kind: input, shape index: {}]   ;;  %s1510_s6 = inlined_call_operand.vmem [shape: f32[1,32], index: 6, kind: input, shape index: {}]   ;;  %s1511_s7 = inlined_call_operand.vmem [shape: f32[1,32], index: 7, kind: input, shape index: {}]   ;;  %s1512_s8 = inlined_call_operand.vmem [shape: f32[1,32], index: 8, kind: input, shape index: {}]   ;;  %s1513_s9 = inlined_call_operand.hbm [shape: f32[2,8,32], index: 9, kind: output, shape index: {}]  }
   0x1   :  { %15 = vsyncpa [#allocation7], 0 }
   0x2   :  { %16 = vsyncpa [#allocation10], 0 }
   0x3   :  { %17 = vsyncpa [#allocation5], 0  ;;  %s35_s11 = sshll.u32 %s1505_s1, 4  ;;  %s1235_s12 = smov [#allocation6]   ;;  %s36_s11 = int_to_ptr.hbm [resolvable:$true] %s35_s11 }
   0x4   :  { %s37_s13 = sshll.u32 %s1235_s12, 4  ;;  %s22_s16 = sshll.u32 %s1504_s0, 4  ;;  %s38_s13 = int_to_ptr.vmem [resolvable:$true] %s37_s13  ;;  %s23_s16 = int_to_ptr.hbm [resolvable:$true] %s22_s16 }
   0x5   :  { %s1236_s17 = smov 128   ;;  %s1237_s18 = smov 8  }
   0x6   :  { %43 = dma.hbm_to_vmem [thread:$0]  %s36_s11, 512, %s38_s13, [#allocation7], %s1236_s17, %s1236_s17, %s1237_s18  }
   0x7   :  { %s1238_s19 = smov [#allocation3]   ;;  %s50_s1 = sshll.u32 %s1507_s3, 4  ;;  %s51_s1 = int_to_ptr.hbm [resolvable:$true] %s50_s1 }
   0x8   :  { %s24_s20 = sshll.u32 %s1238_s19, 4  ;;  %s65_s24 = sshll.u32 %s1509_s5, 4  ;;  %s25_s20 = int_to_ptr.vmem [resolvable:$true] %s24_s20  ;;  %s66_s24 = int_to_ptr.hbm [resolvable:$true] %s65_s24 }
   0x9   :  { %30 = dma.hbm_to_vmem [thread:$0]  %s23_s16, 256, %s25_s20, [#allocation4], %s1236_s17, %s1236_s17, %s1237_s18  }
   0xa   :  { %s1239_s25 = smov [#allocation8]   ;;  %s1240_s27 = smov [#allocation9]  }
   0xb   :  { %s52_s26 = sshll.u32 %s1239_s25, 4  ;;  %s67_s3 = sshll.u32 %s1240_s27, 4  ;;  %s53_s26 = int_to_ptr.vmem [resolvable:$true] %s52_s26  ;;  %s68_s3 = int_to_ptr.vmem [resolvable:$true] %s67_s3 }
   0xc   :  { %58 = dma.hbm_to_vmem [thread:$0]  %s51_s1, 512, %s53_s26, [#allocation7], %s1236_s17, %s1236_s17, %s1237_s18  }
   0xd   :  { %73 = dma.hbm_to_vmem [thread:$0]  %s66_s24, 512, %s68_s3, [#allocation10], %s1236_s17, %s1236_s17, %s1237_s18  }
   0xe   :  { %1227 = dma.done.wait [#allocation4], 256  }
   0xf   :  { %1228 = vsyncadd [#allocation4], 4294967040 }
  0x10   :  { %1229 = dma.done.wait [#allocation7], 1024  }
  0x11   :  { %1230 = vsyncadd [#allocation7], 4294966272 }
  0x12   :  { %1231 = dma.done.wait [#allocation10], 512  }
  0x13   :  { %1232 = vsyncadd [#allocation10], 4294966784  ;;  %v101_v0 = vld [vmem:[#allocation6 + $0x18] sm:$0xff]  ;;  %v100_v2 = vld [vmem:[#allocation6 + $0x10] sm:$0xff]  ;;  %vm106_vm0 = vcmask 261120   ;;  %vm207_vm1 = vcmask 64512  }
  0x14   :  { %v139_v1 = vld [vmem:[#allocation8 + $0x18] sm:$0xff]  ;;  %125 = vmatpush.msra.mxu0 %v101_v0  ;;  %v138_v3 = vld [vmem:[#allocation8 + $0x10] sm:$0xff]  ;;  %v99_v4 = vld [vmem:[#allocation6 + $0x8] sm:$0xff]  ;;  %s1241_s10 = smov 112   ;;  %s1242_s11 = smov 120  }
  0x15   :  { %156 = vmatpush.msra.mxu1 %v139_v1  ;;  %v137_v5 = vld [vmem:[#allocation8 + $0x8] sm:$0xff]  ;;  %v98_v6 = vld [vmem:[#allocation6] sm:$0xff]  ;;  %v1322_v8 = vld [vmem:[#allocation3] sm:$0xff]  ;;  %s1245_s13 = smov 24  }
  0x16   :  { %126 = vmatpush.msra.mxu0 %v100_v2  ;;  %v136_v7 = vld [vmem:[#allocation8] sm:$0xff]  ;;  %v1328_v9 = vld [vmem:[#allocation3 + $0x8] sm:$0xff]  ;;  %v1064_v10 = vld [vmem:[%s1506_s2] ss:$0 sm:$0xff]  ;;  %s1243_s2 = smov 104  }
  0x17   :  { %157 = vmatpush.msra.mxu1 %v138_v3  ;;  %v1065_v11 = vld [vmem:[%s1508_s4] ss:$0 sm:$0xff]  ;;  %v170_v20 = vld [vmem:[#allocation9 + $0x18] sm:$0xff]  ;;  %v168_v22 = vld [vmem:[#allocation9 + $0x8] sm:$0xff] }
  0x18   :  { %127 = vmatpush.msra.mxu0 %v99_v4  ;;  %v169_v21 = vld [vmem:[#allocation9 + $0x10] sm:$0xff]  ;;  %187 = vmatpush.msra.mxu2 %v170_v20  ;;  %v167_v23 = vld [vmem:[#allocation9] sm:$0xff] }
  0x19   :  { %158 = vmatpush.msra.mxu1 %v137_v5  ;;  %v1066_v42 = vld [vmem:[%s1510_s6] ss:$0 sm:$0xff]  ;;  %s1244_s6 = smov 16  }
  0x1a   :  { %128 = vmatpush.msra.mxu0 %v98_v6  ;;  %188 = vmatpush.msra.mxu2 %v169_v21 }
  0x1b   :  { %159 = vmatpush.msra.mxu1 %v136_v7  ;;  %1012 = vmatmul.msk.f32.vlgmr.msra.gmra.mxu0 %vm106_vm0, %v1322_v8 }
  0x1c   :  { %1014 = vmatmul.msk.f32.vlgmr.msra.gmra.mxu1 %vm106_vm0, %v1322_v8  ;;  %189 = vmatpush.msra.mxu2 %v168_v22 }
  0x1e   :  { %190 = vmatpush.msra.mxu2 %v167_v23 }
  0x1f   :  { %1016 = vmatmul.msk.f32.vlgmr.msra.gmra.mxu2 %vm106_vm0, %v1322_v8 }
  0x23   :  { %1013 = vmatmul.msk.f32.gmra.mxu0 %vm106_vm0, %v1328_v9 }
  0x24   :  { %1015 = vmatmul.msk.f32.gmra.mxu1 %vm106_vm0, %v1328_v9 }
  0x27   :  { %1017 = vmatmul.msk.f32.gmra.mxu2 %vm106_vm0, %v1328_v9 }
  0x98   :  { %v130_v12 = vpop.f32.mrf.mxu0 }
  0x99   :  { %v161_v13 = vpop.f32.mrf.mxu1  ;;  %v131_v14 = vadd.f32 %v1064_v10, %v130_v12 }
  0x9a   :  { %v162_v15 = vadd.f32 %v1065_v11, %v161_v13 }
  0x9b   :  { %366 = vrot.lane.b32.xlu1 %v131_v14, %s1242_s11 }
  0x9c   :  { %536 = vrot.lane.b32.xlu2 %v162_v15, %s1241_s10  ;;  %368 = vrot.lane.b32.xlu0 %v162_v15, %s1242_s11 }
  0x9d   :  { %1018 = vmatpush.xpose.msk.msra.mxu3 %vm207_vm1, %v162_v15 }
  0xa0   :  { %1019 = vmatmul.msk.f32.vlgmr.msra.gmra.mxu3 %vm207_vm1, %v131_v14  ;;  %v133_v16 = vpop.f32.mrf.mxu0 }
  0xa1   :  { %v164_v17 = vpop.f32.mrf.mxu1  ;;  %v134_v18 = vadd.f32 %v1064_v10, %v133_v16 }
  0xa2   :  { %v165_v19 = vadd.f32 %v1065_v11, %v164_v17  ;;  %v192_v43 = vpop.f32.mrf.mxu2 }
  0xa3   :  { %394 = vrot.lane.b32.xlu1 %v134_v18, %s1242_s11  ;;  %v193_v44 = vadd.f32 %v1066_v42, %v192_v43  ;;  %v202_v43 = vlaneseq }
  0xa4   :  { %564 = vrot.lane.b32.xlu2 %v165_v19, %s1241_s10  ;;  %396 = vrot.lane.b32.xlu0 %v165_v19, %s1242_s11 }
  0xa5   :  { %1020 = vmatpush.xpose.msk.msrb.mxu3 %vm207_vm1, %v165_v19  ;;  %vm198_vm4 = vcmp.ne.f32.partialorder %v193_v44, %v193_v44 }
  0xa6   :  { %v1377_v45 = vsel %vm198_vm4, 0.0, %v193_v44  ;;  %vm1022_vm5 = vmneg %vm198_vm4 }
  0xa8   :  { %1021 = vmatmul.msk.f32.vlgmr.msrb.gmra.mxu3 %vm207_vm1, %v134_v18 }
  0xa9   :  { %1023 = vmatpush.msk.msra.mxu3 %vm1022_vm5, %v193_v44 }
  0xaa   :  { %v195_v46 = vpop.f32.mrf.mxu2 }
  0xab   :  { %562 = vrot.lane.b32.xlu1 %v134_v18, %s1241_s10  ;;  %v196_v47 = vadd.f32 %v1066_v42, %v195_v46 }
  0xac   :  { %702 = vrot.lane.b32.xlu2 %v162_v15, %s1243_s2  ;;  %534 = vrot.lane.b32.xlu0 %v131_v14, %s1241_s10 }
  0xad   :  { %vm199_vm6 = vcmp.ne.f32.partialorder %v196_v47, %v196_v47 }
  0xae   :  { %v1379_v48 = vsel %vm199_vm6, 0.0, %v196_v47  ;;  %vm1025_vm7 = vmneg %vm199_vm6 }
  0xaf   :  { %1026 = vmatpush.msk.msrb.mxu0 %vm1025_vm7, %v196_v47  ;;  %v1059_v10 = vpack.i.bf16 %v1379_v48, %v1377_v45 }
  0xb3   :  { %700 = vrot.lane.b32.xlu1 %v131_v14, %s1243_s2 }
  0xb4   :  { %728 = vrot.lane.b32.xlu2 %v134_v18, %s1243_s2  ;;  %730 = vrot.lane.b32.xlu0 %v165_v19, %s1243_s2 }
  0xf6   :  { %v537_v24 = vpop.permute.xlu2 %536 }
  0xfe   :  { %v565_v25 = vpop.permute.xlu2 %564 }
 0x106   :  { %v703_v28 = vpop.permute.xlu2 %702 }
 0x10d   :  { %v367_v27 = vpop.permute.xlu1 %366 }
 0x10e   :  { %v369_v26 = vpop.permute.xlu0 %368  ;;  %v729_v38 = vpop.permute.xlu2 %728 }
 0x10f   :  { %1028 = vmatpush.xpose.msk.msrb.mxu1 %vm207_vm1, %v369_v26 }
 0x112   :  { %1029 = vmatmul.msk.f32.vlgmr.msrb.gmra.mxu1 %vm207_vm1, %v367_v27 }
 0x113   :  { %1034 = vmatpush.xpose.msk.msra.mxu1 %vm207_vm1, %v537_v24 }
 0x115   :  { %v395_v30 = vpop.permute.xlu1 %394 }
 0x116   :  { %v397_v29 = vpop.permute.xlu0 %396 }
 0x117   :  { %1040 = vmatpush.xpose.msk.msrb.mxu1 %vm207_vm1, %v703_v28  ;;  %1030 = vmatpush.xpose.msk.msrb.mxu2 %vm207_vm1, %v397_v29 }
 0x11a   :  { %1031 = vmatmul.msk.f32.vlgmr.msrb.gmra.mxu2 %vm207_vm1, %v395_v30 }
 0x11b   :  { %1036 = vmatpush.xpose.msk.msra.mxu2 %vm207_vm1, %v565_v25 }
 0x11d   :  { %v563_v32 = vpop.permute.xlu1 %562 }
 0x11e   :  { %v535_v31 = vpop.permute.xlu0 %534 }
 0x11f   :  { %1035 = vmatmul.msk.f32.vlgmr.msra.gmra.mxu1 %vm207_vm1, %v535_v31 }
 0x122   :  { %1037 = vmatmul.msk.f32.vlgmr.msra.gmra.mxu2 %vm207_vm1, %v563_v32 }
 0x123   :  { %v231_v33 = vpop.f32.mrf.mxu3 }
 0x124   :  { %vm260_vm2 = vcmp.ne.f32.partialorder %v231_v33, %v231_v33 }
 0x125   :  { %v262_v34 = vsel %vm260_vm2, -inf, %v231_v33  ;;  %v701_v37 = vpop.permute.xlu1 %700 }
 0x126   :  { %v731_v35 = vpop.permute.xlu0 %730  ;;  %v264_v36 = vsel %vm207_vm1, %v262_v34, -inf }
 0x127   :  { %265 = vmax.xlane.f32.xlu0 %v264_v36  ;;  %1042 = vmatpush.xpose.msk.msrb.mxu2 %vm207_vm1, %v731_v35 }
 0x128   :  { %1041 = vmatmul.msk.f32.vlgmr.msrb.gmra.mxu1 %vm207_vm1, %v701_v37 }
 0x12a   :  { %1043 = vmatmul.msk.f32.vlgmr.msrb.gmra.mxu2 %vm207_vm1, %v729_v38 }
 0x12b   :  { %v257_v39 = vpop.f32.mrf.mxu3 }
 0x12c   :  { %vm261_vm3 = vcmp.ne.f32.partialorder %v257_v39, %v257_v39 }
 0x12d   :  { %v263_v40 = vsel %vm261_vm3, -inf, %v257_v39 }
 0x12e   :  { %v267_v41 = vsel %vm207_vm1, %v263_v40, -inf }
 0x12f   :  { %268 = vmax.xlane.f32.xlu1 %v267_v41 }
 0x18f   :  { %v391_v49 = vpop.f32.mrf.mxu1 }
 0x190   :  { %vm422_vm8 = vcmp.ne.f32.partialorder %v391_v49, %v391_v49 }
 0x191   :  { %v424_v50 = vsel %vm422_vm8, -inf, %v391_v49 }
 0x192   :  { %v426_v51 = vsel %vm207_vm1, %v424_v50, -inf }
 0x193   :  { %427 = vmax.xlane.f32.xlu2 %v426_v51 }
 0x19a   :  { %v266_v52 = vpop.xlane.xlu0 %265 }
 0x19b   :  { %v270_v53 = vsub.f32 %v262_v34, %v266_v52 }
 0x19c   :  { %v559_v54 = vpop.f32.mrf.mxu1 }
 0x19d   :  { %v272_v55 = vmul.f32 1.442695, %v270_v53  ;;  %vm590_vm9 = vcmp.ne.f32.partialorder %v559_v54, %v559_v54  ;;  %v419_v56 = vpop.f32.mrf.mxu2 }
 0x19e   :  { %vm423_vm10 = vcmp.ne.f32.partialorder %v419_v56, %v419_v56  ;;  %v592_v57 = vsel %vm590_vm9, -inf, %v559_v54 }
 0x19f   :  { %1069 = vpow2.f32 %v272_v55  ;;  %v594_v58 = vsel %vm207_vm1, %v592_v57, -inf  ;;  %v425_v59 = vsel %vm423_vm10, -inf, %v419_v56 }
 0x1a0   :  { %595 = vmax.xlane.f32.xlu0 %v594_v58  ;;  %v429_v60 = vsel %vm207_vm1, %v425_v59, -inf  ;;  %v205_v58 = vand.u32 127, %v202_v43 }
 0x1a1   :  { %430 = vmax.xlane.f32.xlu2 %v429_v60 }
 0x1a2   :  { %v269_v11 = vpop.xlane.xlu1 %268 }
 0x1a3   :  { %v271_v12 = vsub.f32 %v263_v40, %v269_v11 }
 0x1a5   :  { %v1384_v61 = vpop.eup %1069  ;;  %v725_v62 = vpop.f32.mrf.mxu1  ;;  %v274_v13 = vmul.f32 1.442695, %v271_v12 }
 0x1a6   :  { %v587_v63 = vpop.f32.mrf.mxu2  ;;  %vm756_vm11 = vcmp.ne.f32.partialorder %v725_v62, %v725_v62  ;;  %v276_v0 = vsel %vm207_vm1, %v1384_v61, 0.0 }
 0x1a7   :  { %v758_v1 = vsel %vm756_vm11, -inf, %v725_v62  ;;  %277 = vadd.xlane.f32.xlu1 %v276_v0  ;;  %vm591_vm12 = vcmp.ne.f32.partialorder %v587_v63, %v587_v63  ;;  %1071 = vpow2.f32 %v274_v13 }
 0x1a8   :  { %v760_v2 = vsel %vm207_vm1, %v758_v1, -inf  ;;  %v593_v3 = vsel %vm591_vm12, -inf, %v587_v63 }
 0x1a9   :  { %761 = vmax.xlane.f32.xlu2 %v760_v2  ;;  %v597_v5 = vsel %vm207_vm1, %v593_v3, -inf }
 0x1ad   :  { %v1399_v14 = vpop.eup %1071 }
 0x1ae   :  { %v753_v4 = vpop.f32.mrf.mxu2  ;;  %v279_v15 = vsel %vm207_vm1, %v1399_v14, 0.0 }
 0x1af   :  { %vm757_vm13 = vcmp.ne.f32.partialorder %v753_v4, %v753_v4  ;;  %598 = vmax.xlane.f32.xlu1 %v597_v5 }
 0x1b0   :  { %v1390_v6 = vsel %vm757_vm13, -inf, %v753_v4 }
 0x1b1   :  { %v763_v7 = vsel %vm207_vm1, %v1390_v6, -inf }
 0x1b2   :  { %764 = vmax.xlane.f32.xlu0 %v763_v7 }
 0x1c1   :  { %1060 = vrot.lane.b32.xlu2 %v1059_v10, %s1242_s11 }
 0x1c8   :  { %648 = vrot.lane.b32.xlu1 %v1377_v45, %s1241_s10 }
 0x1ea   :  { %280 = vadd.xlane.f32.xlu2 %v279_v15 }
 0x206   :  { %v428_v16 = vpop.xlane.xlu2 %427 }
 0x207   :  { %v432_v17 = vsub.f32 %v424_v50, %v428_v16 }
 0x209   :  { %v434_v18 = vmul.f32 1.442695, %v432_v17 }
 0x20b   :  { %1073 = vpow2.f32 %v434_v18 }
 0x211   :  { %v1403_v19 = vpop.eup %1073 }
 0x212   :  { %v438_v20 = vsel %vm207_vm1, %v1403_v19, 0.0 }
 0x213   :  { %439 = vadd.xlane.f32.xlu0 %v438_v20  ;;  %v596_v21 = vpop.xlane.xlu0 %595 }
 0x214   :  { %v600_v22 = vsub.f32 %v592_v57, %v596_v21  ;;  %v431_v23 = vpop.xlane.xlu2 %430  ;;  %v203_v57 = vshrl.u32 %v202_v43, 7 }
 0x215   :  { %v433_v24 = vsub.f32 %v425_v59, %v431_v23 }
 0x216   :  { %v602_v25 = vmul.f32 1.442695, %v600_v22  ;;  %vm1423_vm4 = vcmp.ge.s32.totalorder %v205_v58, %v203_v57 }
 0x217   :  { %v436_v26 = vmul.f32 1.442695, %v433_v24 }
 0x218   :  { %1075 = vpow2.f32 %v602_v25 }
 0x219   :  { %1077 = vpow2.f32 %v436_v26 }
 0x21a   :  { %v278_v27 = vpop.xlane.xlu1 %277 }
 0x21b   :  { %1079 = vrcp.f32 %v278_v27  ;;  %v293_v40 = vand.u32 2147483648, %v278_v27  ;;  %v291_v51 = vand.u32 2147483647, %v278_v27  ;;  %vm287_vm15 = vweird.f32 %v278_v27 }
 0x21c   :  { %v762_v28 = vpop.xlane.xlu2 %761 }
 0x21d   :  { %v766_v29 = vsub.f32 %v758_v1, %v762_v28  ;;  %v294_v55 = vor.u32 1.1754944e-38, %v293_v40  ;;  %vm292_vm3 = vcmp.eq.f32.partialorder %v291_v51, 8.507059e+37 }
 0x21e   :  { %v1407_v30 = vpop.eup %1075 }
 0x21f   :  { %v1409_v31 = vpop.eup %1077  ;;  %v768_v32 = vmul.f32 1.442695, %v766_v29  ;;  %v606_v33 = vsel %vm207_vm1, %v1407_v30, 0.0 }
 0x220   :  { %607 = vadd.xlane.f32.xlu2 %v606_v33  ;;  %v441_v34 = vsel %vm207_vm1, %v1409_v31, 0.0 }
 0x221   :  { %v1080_v35 = vpop.eup %1079  ;;  %1081 = vpow2.f32 %v768_v32  ;;  %442 = vadd.xlane.f32.xlu1 %v441_v34 }
 0x222   :  { %v283_v36 = vmul.f32 %v1080_v35, %v278_v27  ;;  %v599_v37 = vpop.xlane.xlu1 %598  ;;  %vm288_vm14 = vweird.f32 %v1080_v35 }
 0x223   :  { %v601_v38 = vsub.f32 %v593_v3, %v599_v37  ;;  %vm289_vm2 = vmor %vm287_vm15, %vm288_vm14 }
 0x224   :  { %v284_v39 = vsub.f32 1.0, %v283_v36  ;;  %v1061_v41 = vpop.permute.xlu2 %1060 }
 0x225   :  { %v765_v42 = vpop.xlane.xlu0 %764  ;;  %v604_v44 = vmul.f32 1.442695, %v601_v38  ;;  %v1063_v46 = vunpack.i.h.bf16 %v1061_v41  ;;  %v1062_v47 = vunpack.i.l.bf16 %v1061_v41 }
 0x226   :  { %v767_v49 = vsub.f32 %v1390_v6, %v765_v42  ;;  %v285_v50 = vmul.f32 %v1080_v35, %v284_v39 }
 0x227   :  { %v1416_v52 = vpop.eup %1081  ;;  %1083 = vpow2.f32 %v604_v44  ;;  %502 = vmatpush.msrb.mxu3 %v1062_v47  ;;  %529 = vmatpush.msra.mxu0 %v1063_v46 }
 0x228   :  { %v286_v53 = vadd.f32 %v1080_v35, %v285_v50  ;;  %v772_v54 = vsel %vm207_vm1, %v1416_v52, 0.0  ;;  %v770_v56 = vmul.f32 1.442695, %v767_v49 }
 0x229   :  { %773 = vadd.xlane.f32.xlu1 %v772_v54 }
 0x22a   :  { %v290_v59 = vsel %vm289_vm2, %v1080_v35, %v286_v53  ;;  %1085 = vpow2.f32 %v770_v56 }
 0x22b   :  { %v295_v60 = vsel %vm292_vm3, %v294_v55, %v290_v59 }
 0x22c   :  { %v310_v62 = vmul.f32 %v1384_v61, %v295_v60 }
 0x22d   :  { %v1421_v63 = vpop.eup %1083 }
 0x22e   :  { %v609_v1 = vsel %vm207_vm1, %v1421_v63, 0.0  ;;  %vm312_vm5 = vcmp.ne.f32.partialorder %v310_v62, %v310_v62 }
 0x22f   :  { %610 = vadd.xlane.f32.xlu0 %v609_v1  ;;  %v314_v2 = vsel %vm312_vm5, 0.0, %v310_v62 }
 0x230   :  { %v318_v3 = vsel %vm1423_vm4, %v314_v2, 0.0  ;;  %v1432_v4 = vpop.eup %1085 }
 0x231   :  { %1024 = vmatmul.msk.f32.vlgmr.msra.gmra.mxu3 %vm207_vm1, %v318_v3  ;;  %v775_v61 = vsel %vm207_vm1, %v1432_v4, 0.0 }
 0x237   :  { %776 = vadd.xlane.f32.xlu0 %v775_v61 }
 0x238   :  { %814 = vrot.lane.b32.xlu2 %v1377_v45, %s1243_s2 }
 0x23a   :  { %v649_v5 = vpop.permute.xlu1 %648 }
 0x23b   :  { %669 = vmatpush.msra.mxu3 %v649_v5 }
 0x242   :  { %840 = vrot.lane.b32.xlu1 %v1379_v48, %s1243_s2 }
 0x24b   :  { %674 = vrot.lane.b32.xlu0 %v1379_v48, %s1241_s10 }
 0x25d   :  { %v281_v6 = vpop.xlane.xlu2 %280 }
 0x25e   :  { %1087 = vrcp.f32 %v281_v6  ;;  %v307_v12 = vand.u32 2147483648, %v281_v6  ;;  %v305_v15 = vand.u32 2147483647, %v281_v6  ;;  %vm301_vm7 = vweird.f32 %v281_v6 }
 0x260   :  { %v308_v45 = vor.u32 1.1754944e-38, %v307_v12  ;;  %vm306_vm9 = vcmp.eq.f32.partialorder %v305_v15, 8.507059e+37 }
 0x264   :  { %v1088_v7 = vpop.eup %1087 }
 0x265   :  { %v297_v10 = vmul.f32 %v1088_v7, %v281_v6  ;;  %vm302_vm6 = vweird.f32 %v1088_v7 }
 0x266   :  { %vm303_vm8 = vmor %vm301_vm7, %vm302_vm6 }
 0x267   :  { %v298_v11 = vsub.f32 1.0, %v297_v10 }
 0x269   :  { %v299_v13 = vmul.f32 %v1088_v7, %v298_v11 }
 0x26b   :  { %v300_v16 = vadd.f32 %v1088_v7, %v299_v13 }
 0x26d   :  { %v304_v17 = vsel %vm303_vm8, %v1088_v7, %v300_v16 }
 0x26e   :  { %v309_v18 = vsel %vm306_vm9, %v308_v45, %v304_v17 }
 0x26f   :  { %v311_v20 = vmul.f32 %v1399_v14, %v309_v18 }
 0x271   :  { %vm313_vm10 = vcmp.ne.f32.partialorder %v311_v20, %v311_v20 }
 0x272   :  { %v315_v48 = vsel %vm313_vm10, 0.0, %v311_v20 }
 0x273   :  { %v319_v21 = vsel %vm1423_vm4, %v315_v48, 0.0 }
 0x274   :  { %1027 = vmatmul.msk.f32.vlgmr.msrb.gmra.mxu0 %vm207_vm1, %v319_v21 }
 0x286   :  { %v440_v22 = vpop.xlane.xlu0 %439 }
 0x287   :  { %1089 = vrcp.f32 %v440_v22  ;;  %v455_v26 = vand.u32 2147483648, %v440_v22  ;;  %v453_v28 = vand.u32 2147483647, %v440_v22  ;;  %vm449_vm12 = vweird.f32 %v440_v22 }
 0x289   :  { %v456_v33 = vor.u32 1.1754944e-38, %v455_v26  ;;  %vm454_vm14 = vcmp.eq.f32.partialorder %v453_v28, 8.507059e+37 }
 0x28d   :  { %v1090_v23 = vpop.eup %1089 }
 0x28e   :  { %v445_v24 = vmul.f32 %v1090_v23, %v440_v22  ;;  %vm450_vm11 = vweird.f32 %v1090_v23 }
 0x28f   :  { %vm451_vm13 = vmor %vm449_vm12, %vm450_vm11 }
 0x290   :  { %v446_v25 = vsub.f32 1.0, %v445_v24 }
 0x292   :  { %v447_v27 = vmul.f32 %v1090_v23, %v446_v25 }
 0x293   :  { %v608_v29 = vpop.xlane.xlu2 %607 }
 0x294   :  { %v448_v32 = vadd.f32 %v1090_v23, %v447_v27  ;;  %1091 = vrcp.f32 %v608_v29  ;;  %v443_v14 = vpop.xlane.xlu1 %442  ;;  %v621_v51 = vand.u32 2147483647, %v608_v29  ;;  %vm617_vm5 = vweird.f32 %v608_v29 }
 0x295   :  { %1093 = vrcp.f32 %v443_v14  ;;  %v469_v50 = vand.u32 2147483648, %v443_v14  ;;  %v467_v54 = vand.u32 2147483647, %v443_v14  ;;  %vm463_vm7 = vweird.f32 %v443_v14 }
 0x296   :  { %v452_v34 = vsel %vm451_vm13, %v1090_v23, %v448_v32  ;;  %vm622_vm9 = vcmp.eq.f32.partialorder %v621_v51, 8.507059e+37 }
 0x297   :  { %v457_v35 = vsel %vm454_vm14, %v456_v33, %v452_v34  ;;  %v470_v62 = vor.u32 1.1754944e-38, %v469_v50  ;;  %vm468_vm10 = vcmp.eq.f32.partialorder %v467_v54, 8.507059e+37 }
 0x298   :  { %v472_v36 = vmul.f32 %v1403_v19, %v457_v35  ;;  %v623_v19 = vand.u32 2147483648, %v608_v29 }
 0x29a   :  { %v1092_v37 = vpop.eup %1091  ;;  %vm474_vm15 = vcmp.ne.f32.partialorder %v472_v36, %v472_v36  ;;  %v624_v60 = vor.u32 1.1754944e-38, %v623_v19 }
 0x29b   :  { %v1094_v38 = vpop.eup %1093  ;;  %v613_v39 = vmul.f32 %v1092_v37, %v608_v29  ;;  %v815_v40 = vpop.permute.xlu2 %814  ;;  %v476_v41 = vsel %vm474_vm15, 0.0, %v472_v36  ;;  %vm618_vm2 = vweird.f32 %v1092_v37 }
 0x29c   :  { %v459_v42 = vmul.f32 %v1094_v38, %v443_v14  ;;  %v774_v43 = vpop.xlane.xlu1 %773  ;;  %v478_v44 = vsel %vm1423_vm4, %v476_v41, 0.0  ;;  %vm464_vm3 = vweird.f32 %v1094_v38  ;;  %vm619_vm6 = vmor %vm617_vm5, %vm618_vm2 }
 0x29d   :  { %v614_v46 = vsub.f32 1.0, %v613_v39  ;;  %1095 = vrcp.f32 %v774_v43  ;;  %1032 = vmatmul.msk.f32.vlgmr.msrb.gmra.mxu3 %vm207_vm1, %v478_v44  ;;  %vm465_vm8 = vmor %vm463_vm7, %vm464_vm3  ;;  %v787_v10 = vand.u32 2147483647, %v774_v43  ;;  %v789_v11 = vand.u32 2147483648, %v774_v43 }
 0x29e   :  { %v460_v47 = vsub.f32 1.0, %v459_v42  ;;  %835 = vmatpush.msrb.mxu3 %v815_v40  ;;  %vm783_vm14 = vweird.f32 %v774_v43 }
 0x29f   :  { %v615_v49 = vmul.f32 %v1092_v37, %v614_v46  ;;  %vm788_vm2 = vcmp.eq.f32.partialorder %v787_v10, 8.507059e+37 }
 0x2a0   :  { %v461_v53 = vmul.f32 %v1094_v38, %v460_v47 }
 0x2a1   :  { %v616_v55 = vadd.f32 %v1092_v37, %v615_v49 }
 0x2a2   :  { %v462_v56 = vadd.f32 %v1094_v38, %v461_v53  ;;  %v611_v57 = vpop.xlane.xlu0 %610 }
 0x2a3   :  { %v1096_v58 = vpop.eup %1095  ;;  %v620_v59 = vsel %vm619_vm6, %v1092_v37, %v616_v55  ;;  %1097 = vrcp.f32 %v611_v57  ;;  %v637_v22 = vand.u32 2147483648, %v611_v57  ;;  %v635_v25 = vand.u32 2147483647, %v611_v57 }
 0x2a4   :  { %v466_v1 = vsel %vm465_vm8, %v1094_v38, %v462_v56  ;;  %v779_v2 = vmul.f32 %v1096_v58, %v774_v43  ;;  %v625_v3 = vsel %vm622_vm9, %v624_v60, %v620_v59  ;;  %vm784_vm11 = vweird.f32 %v1096_v58 }
 0x2a5   :  { %v471_v61 = vsel %vm468_vm10, %v470_v62, %v466_v1  ;;  %v640_v6 = vmul.f32 %v1407_v30, %v625_v3  ;;  %vm785_vm15 = vmor %vm783_vm14, %vm784_vm11  ;;  %v790_v30 = vor.u32 1.1754944e-38, %v789_v11  ;;  %vm631_vm5 = vweird.f32 %v611_v57 }
 0x2a6   :  { %v780_v5 = vsub.f32 1.0, %v779_v2  ;;  %v473_v7 = vmul.f32 %v1409_v31, %v471_v61  ;;  %v638_v29 = vor.u32 1.1754944e-38, %v637_v22  ;;  %vm636_vm8 = vcmp.eq.f32.partialorder %v635_v25, 8.507059e+37 }
 0x2a7   :  { %vm642_vm12 = vcmp.ne.f32.partialorder %v640_v6, %v640_v6 }
 0x2a8   :  { %v781_v12 = vmul.f32 %v1096_v58, %v780_v5  ;;  %vm475_vm13 = vcmp.ne.f32.partialorder %v473_v7, %v473_v7  ;;  %v644_v15 = vsel %vm642_vm12, 0.0, %v640_v6 }
 0x2a9   :  { %v1098_v13 = vpop.eup %1097  ;;  %v477_v16 = vsel %vm475_vm13, 0.0, %v473_v7  ;;  %v646_v20 = vsel %vm1423_vm4, %v644_v15, 0.0 }
 0x2aa   :  { %v782_v45 = vadd.f32 %v1096_v58, %v781_v12  ;;  %v627_v17 = vmul.f32 %v1098_v13, %v611_v57  ;;  %v777_v18 = vpop.xlane.xlu0 %776  ;;  %1038 = vmatmul.msk.f32.vlgmr.msra.gmra.mxu3 %vm207_vm1, %v646_v20  ;;  %v479_v21 = vsel %vm1423_vm4, %v477_v16, 0.0  ;;  %vm632_vm3 = vweird.f32 %v1098_v13 }
 0x2ab   :  { %1099 = vrcp.f32 %v777_v18  ;;  %1033 = vmatmul.msk.f32.vlgmr.msra.gmra.mxu0 %vm207_vm1, %v479_v21  ;;  %vm633_vm7 = vmor %vm631_vm5, %vm632_vm3  ;;  %v803_v38 = vand.u32 2147483648, %v777_v18  ;;  %v801_v40 = vand.u32 2147483647, %v777_v18  ;;  %vm797_vm10 = vweird.f32 %v777_v18 }
 0x2ac   :  { %v786_v31 = vsel %vm785_vm15, %v1096_v58, %v782_v45  ;;  %v628_v48 = vsub.f32 1.0, %v627_v17  ;;  %vm896_vm15 = vcmask 195584   ;;  %v1246_v21 = vmov 32.0  }
 0x2ad   :  { %v791_v23 = vsel %vm788_vm2, %v790_v30, %v786_v31  ;;  %v804_v42 = vor.u32 1.1754944e-38, %v803_v38  ;;  %vm802_vm13 = vcmp.eq.f32.partialorder %v801_v40, 8.507059e+37  ;;  %1101 = vrcp.f32 %v1246_v21 }
 0x2ae   :  { %v629_v24 = vmul.f32 %v1098_v13, %v628_v48  ;;  %v806_v26 = vmul.f32 %v1416_v52, %v791_v23 }
 0x2b0   :  { %v630_v27 = vadd.f32 %v1098_v13, %v629_v24  ;;  %vm808_vm6 = vcmp.ne.f32.partialorder %v806_v26, %v806_v26 }
 0x2b1   :  { %v1100_v28 = vpop.eup %1099  ;;  %v810_v32 = vsel %vm808_vm6, 0.0, %v806_v26 }
 0x2b2   :  { %v634_v14 = vsel %vm633_vm7, %v1098_v13, %v630_v27  ;;  %v793_v33 = vmul.f32 %v1100_v28, %v777_v18  ;;  %v812_v34 = vsel %vm1423_vm4, %v810_v32, 0.0  ;;  %vm798_vm9 = vweird.f32 %v1100_v28 }
 0x2b3   :  { %1044 = vmatmul.msk.f32.vlgmr.msrb.gmra.mxu3 %vm207_vm1, %v812_v34  ;;  %v639_v35 = vsel %vm636_vm8, %v638_v29, %v634_v14  ;;  %vm799_vm12 = vmor %vm797_vm10, %vm798_vm9  ;;  %v1102_v22 = vpop.eup %1101 }
 0x2b4   :  { %v794_v36 = vsub.f32 1.0, %v793_v33  ;;  %v340_v37 = vpop.f32.mrf.mxu3  ;;  %v641_v52 = vmul.f32 %v1421_v63, %v639_v35  ;;  %v841_v19 = vpop.permute.xlu1 %840  ;;  %vm934_vm2 = vweird.f32 %v1102_v22 }
 0x2b5   :  { %866 = vst.msk [vmem:[#allocation2] sm:$0xff] %vm207_vm1, %v340_v37 }
 0x2b6   :  { %v795_v39 = vmul.f32 %v1100_v28, %v794_v36  ;;  %vm643_vm11 = vcmp.ne.f32.partialorder %v641_v52, %v641_v52 }
 0x2b7   :  { %v645_v44 = vsel %vm643_vm11, 0.0, %v641_v52 }
 0x2b8   :  { %v796_v41 = vadd.f32 %v1100_v28, %v795_v39  ;;  %v647_v63 = vsel %vm1423_vm4, %v645_v44, 0.0 }
 0x2ba   :  { %v800_v43 = vsel %vm799_vm12, %v1100_v28, %v796_v41 }
 0x2bb   :  { %v805_v46 = vsel %vm802_vm13, %v804_v42, %v800_v43 }
 0x2bc   :  { %v807_v47 = vmul.f32 %v1432_v4, %v805_v46 }
 0x2bd   :  { %v675_v49 = vpop.permute.xlu0 %674 }
 0x2be   :  { %695 = vmatpush.msrb.mxu0 %v675_v49  ;;  %vm809_vm14 = vcmp.ne.f32.partialorder %v807_v47, %v807_v47 }
 0x2bf   :  { %1039 = vmatmul.msk.f32.vlgmr.msrb.gmra.mxu0 %vm207_vm1, %v647_v63  ;;  %v811_v50 = vsel %vm809_vm14, 0.0, %v807_v47  ;;  %v1067_v63 = vld [vmem:[%s1511_s7] ss:$0 sm:$0xff]  ;;  %s1247_s7 = smov [#allocation11]  }
 0x2c0   :  { %861 = vmatpush.msra.mxu0 %v841_v19  ;;  %v813_v51 = vsel %vm1423_vm4, %v811_v50, 0.0  ;;  %vm894_vm4 = vcmask 130048   ;;  %s992_s20 = sshll.u32 %s1247_s7, 4  ;;  %s993_s20 = int_to_ptr.vmem [resolvable:$true] %s992_s20 }
 0x2c7   :  { %1045 = vmatmul.msk.f32.vlgmr.msra.gmra.mxu0 %vm207_vm1, %v813_v51  ;;  %v1068_v51 = vld [vmem:[%s1512_s8] ss:$0 sm:$0xff]  ;;  %s994_s8 = sshll.u32 %s1513_s9, 4  ;;  %s995_s8 = int_to_ptr.hbm [resolvable:$true] %s994_s8 }
 0x2f1   :  { %v363_v53 = vpop.f32.mrf.mxu0 }
 0x2f2   :  { %867 = vst.msk [vmem:[#allocation2 + $0x20] sm:$0xff] %vm207_vm1, %v363_v53 }
 0x320   :  { %v504_v4 = vpop.f32.mrf.mxu3 }
 0x321   :  { %868 = vst.msk [vmem:[#allocation2 + $0x8] sm:$0xff] %vm207_vm1, %v504_v4 }
 0x328   :  { %v531_v54 = vpop.f32.mrf.mxu0 }
 0x329   :  { %869 = vst.msk [vmem:[#allocation2 + $0x28] sm:$0xff] %vm207_vm1, %v531_v54 }
 0x32d   :  { %v671_v55 = vpop.f32.mrf.mxu3 }
 0x32e   :  { %870 = vst.msk [vmem:[#allocation2 + $0x10] sm:$0xff] %vm207_vm1, %v671_v55 }
 0x336   :  { %v837_v56 = vpop.f32.mrf.mxu3 }
 0x337   :  { %872 = vst.msk [vmem:[#allocation2 + $0x18] sm:$0xff] %vm207_vm1, %v837_v56 }
 0x33c   :  { %v697_v57 = vpop.f32.mrf.mxu0 }
 0x33d   :  { %871 = vst.msk [vmem:[#allocation2 + $0x30] sm:$0xff] %vm207_vm1, %v697_v57 }
 0x33e   :  { %v878_v0 = vld [vmem:[#allocation2 + $0x2] ss:$4 sm:$0xff]  ;;  %v876_v58 = vld [vmem:[#allocation2 + $0x1] ss:$4 sm:$0xff]  ;;  %v880_v2 = vld [vmem:[#allocation2 + $0x3] ss:$4 sm:$0xff] }
 0x33f   :  { %886 = vrot.lane.b32.xlu1 %v878_v0, %s1244_s6  ;;  %882 = vrot.lane.b32.xlu0 %v876_v58, %s1237_s18  ;;  %v874_v5 = vld [vmem:[#allocation2] ss:$4 sm:$0xff] }
 0x344   :  { %v863_v59 = vpop.f32.mrf.mxu0 }
 0x345   :  { %873 = vst.msk [vmem:[#allocation2 + $0x38] sm:$0xff] %vm207_vm1, %v863_v59 }
 0x34c   :  { %v905_v60 = vld [vmem:[#allocation2 + $0x23] ss:$4 sm:$0xff]  ;;  %v903_v62 = vld [vmem:[#allocation2 + $0x22] ss:$4 sm:$0xff]  ;;  %v901_v1 = vld [vmem:[#allocation2 + $0x21] ss:$4 sm:$0xff] }
 0x34d   :  { %915 = vrot.lane.b32.xlu1 %v905_v60, %s1245_s13  ;;  %911 = vrot.lane.b32.xlu0 %v903_v62, %s1244_s6  ;;  %v899_v16 = vld [vmem:[#allocation2 + $0x20] ss:$4 sm:$0xff] }
 0x34e   :  { %907 = vrot.lane.b32.xlu2 %v901_v1, %s1237_s18 }
 0x356   :  { %890 = vrot.lane.b32.xlu2 %v880_v2, %s1245_s13 }
 0x3a8   :  { %v908_v3 = vpop.permute.xlu2 %907 }
 0x3a9   :  { %v918_v45 = vsel %vm207_vm1, %v899_v16, %v908_v3 }
 0x3b0   :  { %v891_v10 = vpop.permute.xlu2 %890 }
 0x3b1   :  { %v883_v61 = vpop.permute.xlu0 %882  ;;  %v887_v6 = vpop.permute.xlu1 %886 }
 0x3b2   :  { %v893_v7 = vsel %vm207_vm1, %v874_v5, %v883_v61 }
 0x3b3   :  { %v895_v11 = vsel %vm894_vm4, %v893_v7, %v887_v6 }
 0x3b4   :  { %v897_v12 = vsel %vm896_vm15, %v895_v11, %v891_v10 }
 0x3b5   :  { %v921_v13 = vadd.f32 %v897_v12, %v1322_v8  ;;  %v930_v8 = vmul.f32 32.0, %v1102_v22 }
 0x3b7   :  { %v923_v15 = vsel %vm106_vm0, %v921_v13, 0.0  ;;  %v931_v23 = vsub.f32 1.0, %v930_v8 }
 0x3b8   :  { %924 = vadd.xlane.f32.xlu0 %v923_v15 }
 0x3b9   :  { %v932_v24 = vmul.f32 %v1102_v22, %v931_v23 }
 0x3bb   :  { %v933_v25 = vadd.f32 %v1102_v22, %v932_v24 }
 0x3bd   :  { %v935_v26 = vsel %vm934_vm2, %v1102_v22, %v933_v25 }
 0x3bf   :  { %v912_v17 = vpop.permute.xlu0 %911  ;;  %v916_v18 = vpop.permute.xlu1 %915 }
 0x3c0   :  { %v919_v20 = vsel %vm894_vm4, %v918_v45, %v912_v17 }
 0x3c1   :  { %v920_v30 = vsel %vm896_vm15, %v919_v20, %v916_v18 }
 0x3c2   :  { %v922_v31 = vadd.f32 %v920_v30, %v1328_v9 }
 0x3c4   :  { %v926_v48 = vsel %vm106_vm0, %v922_v31, 0.0 }
 0x3c5   :  { %927 = vadd.xlane.f32.xlu2 %v926_v48 }
 0x42b   :  { %v925_v27 = vpop.xlane.xlu0 %924 }
 0x42c   :  { %v936_v28 = vmul.f32 %v935_v26, %v925_v27 }
 0x42e   :  { %v938_v29 = vsub.f32 %v921_v13, %v936_v28 }
 0x430   :  { %v940_v32 = vmul.f32 %v938_v29, %v938_v29 }
 0x432   :  { %v942_v14 = vsel %vm106_vm0, %v940_v32, 0.0 }
 0x433   :  { %943 = vadd.xlane.f32.xlu1 %v942_v14 }
 0x438   :  { %v928_v9 = vpop.xlane.xlu2 %927 }
 0x439   :  { %v937_v33 = vmul.f32 %v935_v26, %v928_v9 }
 0x43b   :  { %v939_v34 = vsub.f32 %v922_v31, %v937_v33 }
 0x43d   :  { %v941_v35 = vmul.f32 %v939_v34, %v939_v34 }
 0x43f   :  { %v945_v36 = vsel %vm106_vm0, %v941_v35, 0.0 }
 0x440   :  { %946 = vadd.xlane.f32.xlu0 %v945_v36 }
 0x4a6   :  { %v944_v37 = vpop.xlane.xlu1 %943 }
 0x4a7   :  { %v948_v52 = vmul.f32 %v944_v37, %v935_v26 }
 0x4a9   :  { %v950_v38 = vadd.f32 1e-05, %v948_v52 }
 0x4ab   :  { %1103 = vrsqrt.f32 %v950_v38  ;;  %vm958_vm3 = vweird.f32 %v950_v38 }
 0x4b1   :  { %v1104_v39 = vpop.eup %1103 }
 0x4b2   :  { %v953_v40 = vmul.f32 %v1104_v39, %v950_v38  ;;  %vm959_vm1 = vweird.f32 %v1104_v39 }
 0x4b3   :  { %v947_v41 = vpop.xlane.xlu0 %946  ;;  %vm960_vm5 = vmor %vm958_vm3, %vm959_vm1 }
 0x4b4   :  { %v954_v42 = vmul.f32 %v1104_v39, %v953_v40  ;;  %v949_v43 = vmul.f32 %v947_v41, %v935_v26 }
 0x4b6   :  { %v955_v44 = vmul.f32 0.5, %v954_v42  ;;  %v951_v46 = vadd.f32 1e-05, %v949_v43 }
 0x4b8   :  { %v956_v47 = vsub.f32 1.5, %v955_v44  ;;  %1105 = vrsqrt.f32 %v951_v46  ;;  %vm968_vm7 = vweird.f32 %v951_v46 }
 0x4ba   :  { %v957_v49 = vmul.f32 %v1104_v39, %v956_v47 }
 0x4bc   :  { %v961_v19 = vsel %vm960_vm5, %v1104_v39, %v957_v49 }
 0x4bd   :  { %v972_v50 = vmul.f32 %v961_v19, %v938_v29 }
 0x4be   :  { %v1106_v53 = vpop.eup %1105 }
 0x4bf   :  { %v978_v4 = vmul.f32 %v1067_v63, %v972_v50  ;;  %v963_v54 = vmul.f32 %v1106_v53, %v951_v46  ;;  %vm969_vm6 = vweird.f32 %v1106_v53 }
 0x4c0   :  { %vm970_vm8 = vmor %vm968_vm7, %vm969_vm6 }
 0x4c1   :  { %v964_v55 = vmul.f32 %v1106_v53, %v963_v54  ;;  %v984_v56 = vadd.f32 %v1068_v51, %v978_v4 }
 0x4c3   :  { %v965_v57 = vmul.f32 0.5, %v964_v55  ;;  %986 = vst.msk [vmem:[#allocation11] sm:$0xff] %vm106_vm0, %v984_v56 }
 0x4c5   :  { %v966_v0 = vsub.f32 1.5, %v965_v57 }
 0x4c7   :  { %v967_v58 = vmul.f32 %v1106_v53, %v966_v0 }
 0x4c9   :  { %v971_v59 = vsel %vm970_vm8, %v1106_v53, %v967_v58 }
 0x4ca   :  { %v973_v60 = vmul.f32 %v971_v59, %v939_v34 }
 0x4cc   :  { %v979_v62 = vmul.f32 %v1067_v63, %v973_v60 }
 0x4ce   :  { %v985_v1 = vadd.f32 %v1068_v51, %v979_v62 }
 0x4d0   :  { %987 = vst.msk [vmem:[#allocation11 + $0x8] sm:$0xff] %vm106_vm0, %v985_v1 }
 0x4d1   :  { %1000 = dma.vmem_to_hbm [thread:$0]  %s993_s20, 256, %s995_s8, [#allocation5], %s1236_s17, %s1236_s17, %s1237_s18  }
 0x4d2   :  { %1233 = dma.done.wait [#allocation5], 256  }
 0x4d3   :  { %1234 = vsyncadd [#allocation5], 4294967040 }
 0x4d4   :  { %1005 = vsyncpa [#allocation4], 1 }
 0x4d5   :  { %1006 = vsyncpa [#allocation7], 1 }
 0x4d6   :  { %1007 = vsyncpa [#allocation10], 1 }
 0x4d7   :  { %1008 = vsyncpa [#allocation5], 1 }

</bundles_post_ra>
